<compile_context>
chip_gen: v7x
topology: tpu7x:2x2x1
jax: 0.10.0
libtpu: 0.0.40
codegen_flags: <defaults>
</compile_context>

<pallas_src>
import functools

import jax
import jax.numpy as jnp
import numpy as np
from jax import lax
from jax.experimental import pallas as pl
from jax.experimental.pallas import tpu as pltpu


def _expand_deconv_elu_kernel(x1_ref, x2_ref, w_ref, b_ref, o_ref, xpad_ref,
                              *, pad_top, pad_left):
    """One grid step of ELU(ConvT2d(k=4,s=2,p=1)(cat([pad(x2), x1], C))), bt images.

    x1_ref:   (bt, H, W, C)        skip connection (NHWC)
    x2_ref:   (bt, H2, W2, C)      up-path feature map (NHWC), spatially smaller
    w_ref:    (9, 4*Cout, 2C)      per-tap phase-decomposed weights, tap = dr*3+dc
    b_ref:    (4*Cout, 1)          bias, rows ordered (co, py, px)
    o_ref:    (4*Cout, bt*H*W)     rows = (co, py, px), cols = (b_local, j, i)
    xpad_ref: (bt, H+2, W+2, 2C)   VMEM scratch: concat([pad(x2), x1]) + 1-px halo
    """
    bt, h, w, c = x1_ref.shape
    _, h2, w2, _ = x2_ref.shape
    c2 = xpad_ref.shape[-1]
    rows = o_ref.shape[0]
    dt = xpad_ref.dtype

    top = 1 + pad_top        # first scratch row holding x2 data
    left = 1 + pad_left      # first scratch col holding x2 data

    # ---- narrowed zero-fill: only the pad + halo border strips --------------
    # (the interior is fully overwritten by the two block stores below)
    xpad_ref[:, 0:top, :, :] = jnp.zeros((bt, top, w + 2, c2), dt)
    xpad_ref[:, top + h2:h + 2, :, :] = jnp.zeros(
        (bt, h + 2 - (top + h2), w + 2, c2), dt)
    xpad_ref[:, top:top + h2, 0:left, :] = jnp.zeros((bt, h2, left, c2), dt)
    xpad_ref[:, top:top + h2, left + w2:w + 2, :] = jnp.zeros(
        (bt, h2, w + 2 - (left + w2), c2), dt)

    # ---- fused F.pad(x2) + channel concat + 1-pixel conv halo ---------------
    xpad_ref[:, top:top + h2, left:left + w2, 0:c] = x2_ref[...]
    xpad_ref[:, 1:1 + h, 1:1 + w, c:c2] = x1_ref[...]

    # ---- 9 accumulating MXU taps (no im2col concat, no transpose) -----------
    npix = bt * h * w
    acc = jnp.zeros((rows, npix), jnp.float32)
    for dr in range(3):
        for dc in range(3):
            # (bt, H, W, 2C) -> (bt*H*W, 2C): leading-dim merge, layout no-op.
            slab = xpad_ref[:, dr:dr + h, dc:dc + w, :].reshape(npix, c2)
            # Contract the channel axis of both operands: the MXU handles the
            # transposed RHS for free (no materialised transpose).
            acc = acc + lax.dot_general(
                w_ref[dr * 3 + dc], slab,
                dimension_numbers=(((1,), (1,)), ((), ())),
                preferred_element_type=jnp.float32)

    acc = acc + b_ref[...]                     # bias folded into the epilogue
    # ELU (alpha=1): clamp before exp so the EUP only sees the <=0 branch.
    # TODO(synk): switch to jnp.expm1 for a closer PyTorch-ELU bit-match.
    neg = jnp.minimum(acc, 0.0)
    y = jnp.where(acc > 0, acc, jnp.exp(neg) - 1.0)
    o_ref[...] = y.astype(o_ref.dtype)


def _build_phase_weights(w_t, bias):
    """Rearrange ConvTranspose2d(k=4,s=2,p=1) weights (Cin2, Cout, 4, 4) into 9
    per-tap matrices w_all[tap] of shape (4*Cout, Cin2).

    tap index = dr*3 + dc             (3x3 halo offset)
    row index = co*4 + py*2 + px      (output channel, output sub-pixel phase)
    The kernel tap used by output phase p at halo offset d is k = 3 + p - 2*d
    (zero contribution when k falls outside [0, 3])."""
    cin2, cout, kh, kw = w_t.shape
    p = np.arange(2)[:, None]
    d = np.arange(3)[None, :]
    kidx = (kh - 1) + p - 2 * d                            # (2, 3): [phase, offset]
    valid = (kidx >= 0) & (kidx <= kh - 1)
    kc = np.clip(kidx, 0, kh - 1)

    wy = jnp.where(valid[None, None, :, :, None],
                   w_t[:, :, kc, :], 0.0)                  # (ci, co, py, dr, KW)
    wfull = jnp.where(valid[None, None, None, None, :, :],
                      wy[:, :, :, :, kc], 0.0)             # (ci, co, py, dr, px, dc)
    w_all = jnp.transpose(wfull, (3, 5, 1, 2, 4, 0))       # (dr, dc, co, py, px, ci)
    w_all = w_all.reshape(9, 4 * cout, cin2)
    b_all = jnp.repeat(bias, 4).reshape(4 * cout, 1)       # row = co*4 + py*2 + px
    return w_all, b_all


def expand_forward(x1_nchw, x2_nchw, w_t, bias, *, images_per_step=1):
    """Expand.forward: pad(x2) ++ x1 -> ConvTranspose2d(k=4,s=2,p=1) -> ELU.
    Inputs/outputs NCHW; weights in PyTorch ConvTranspose2d layout
    (Cin2, Cout, KH, KW)."""
    n, c, h1, w1 = x1_nchw.shape
    _, _, h2, w2 = x2_nchw.shape
    cin2, cout, kh, kw = w_t.shape
    assert (kh, kw) == (4, 4) and cin2 == 2 * c, "specialised to CE(ks=4, s=2, p=1)"

    delta_x = h1 - h2
    delta_y = w1 - w2
    # F.pad(x2, (dx//2, dy//2, dx//2, dy//2)):
    #   W: (left=dx//2, right=dy//2);  H: (top=dx//2, bottom=dy//2).
    # Right/bottom pads come from the zero strips; the module is only
    # well-formed when the padded x2 matches x1 (else torch.cat would fail).
    pad_top = delta_x // 2
    pad_left = delta_x // 2
    assert h2 + delta_x // 2 + delta_y // 2 == h1
    assert w2 + delta_x // 2 + delta_y // 2 == w1

    bt = images_per_step
    assert n % bt == 0, "images_per_step must divide the batch"
    rows = 4 * cout
    npix_step = bt * h1 * w1

    # Tiny layout shuffles in the wrapper; pad/concat/deconv/ELU are fused in
    # one pallas_call (scratch is kept channel-minor so tap reshapes are free).
    x1 = jnp.transpose(x1_nchw, (0, 2, 3, 1))              # (N, H, W, C)
    x2 = jnp.transpose(x2_nchw, (0, 2, 3, 1))              # (N, H2, W2, C)
    w_all, b_all = _build_phase_weights(w_t, bias)         # (9, 4*Cout, 2C), (4*Cout, 1)

    kernel = functools.partial(_expand_deconv_elu_kernel,
                               pad_top=pad_top, pad_left=pad_left)
    out = pl.pallas_call(
        kernel,
        out_shape=jax.ShapeDtypeStruct((rows, n * h1 * w1), x1_nchw.dtype),
        grid_spec=pltpu.PrefetchScalarGridSpec(
            num_scalar_prefetch=0,
            grid=(n // bt,),   # bt images folded into the matmul N per step
            in_specs=[
                pl.BlockSpec((bt, h1, w1, c), lambda b: (b, 0, 0, 0)),
                pl.BlockSpec((bt, h2, w2, c), lambda b: (b, 0, 0, 0)),
                pl.BlockSpec((9, rows, cin2), lambda b: (0, 0, 0)),
                pl.BlockSpec((rows, 1), lambda b: (0, 0)),
            ],
            out_specs=pl.BlockSpec((rows, npix_step), lambda b: (0, b)),
            scratch_shapes=[pltpu.VMEM((bt, h1 + 2, w1 + 2, 2 * c),
                                       x1_nchw.dtype)],
        ),
        compiler_params=pltpu.CompilerParams(
            dimension_semantics=("parallel",),
            vmem_limit_bytes=32 * 1024 * 1024),
    )(x1, x2, w_all, b_all)

    # rows (co, py, px), cols (b, j, i)  ->  NCHW  (n, co, 2j+py, 2i+px)
    y = out.reshape(cout, 2, 2, n, h1, w1)
    y = jnp.transpose(y, (3, 0, 4, 1, 5, 2)).reshape(n, cout, 2 * h1, 2 * w1)
    return y


def _reference_forward(x1_nchw, x2_nchw, w_t, bias):
    """Pure-JAX reference (lax.conv_general_dilated) for validation."""
    delta_x = x1_nchw.shape[2] - x2_nchw.shape[2]
    delta_y = x1_nchw.shape[3] - x2_nchw.shape[3]
    x2_p = jnp.pad(x2_nchw, ((0, 0), (0, 0),
                             (delta_x // 2, delta_y // 2),
                             (delta_x // 2, delta_y // 2)))
    x = jnp.concatenate([x2_p, x1_nchw], axis=1)
    # transposed conv as lhs-dilated conv with flipped kernel
    w_flip = jnp.transpose(w_t, (1, 0, 2, 3))[:, :, ::-1, ::-1]  # (Cout,Cin,KH,KW)
    y = lax.conv_general_dilated(
        x, w_flip,
        window_strides=(1, 1),
        padding=((2, 2), (2, 2)),
        lhs_dilation=(2, 2),
        dimension_numbers=("NCHW", "OIHW", "NCHW"))
    y = y + bias[None, :, None, None]
    return jnp.where(y > 0, y, jnp.exp(y) - 1.0)


if __name__ == "__main__":
    # Expand(input_channel=4, output_channel=4)
    input_channel, output_channel, ks = 4, 4, 4
    key = jax.random.PRNGKey(0)
    k1, k2, k3, k4, k5 = jax.random.split(key, 5)

    # ConvTranspose2d weight in PyTorch layout (Cin=2*input_channel, Cout, KH, KW)
    w_t = 0.05 * jax.random.normal(
        k3, (2 * input_channel, output_channel, ks, ks), jnp.float32)
    bias = 0.01 * jax.random.normal(k4, (output_channel,), jnp.float32)

    # x1 from the skip connection; x2 from below (slightly smaller spatially).
    x1 = jax.random.normal(k1, (2, input_channel, 16, 16), jnp.float32)

    # Two valid size deltas (module requires dx == dy and even) to exercise
    # different pad offsets; run with 1 image/step (grid=2) and with the whole
    # batch folded into the matmul N dimension (grid=1).
    for x2_hw, kk in (((14, 14), k2), ((12, 12), k5)):
        x2 = jax.random.normal(kk, (2, input_channel) + x2_hw, jnp.float32)
        ref = jax.block_until_ready(_reference_forward(x1, x2, w_t, bias))
        for bt in (1, 2):
            out = jax.block_until_ready(
                expand_forward(x1, x2, w_t, bias, images_per_step=bt))
            assert out.shape == (2, output_channel, 32, 32), out.shape
            np.testing.assert_allclose(np.asarray(out), np.asarray(ref),
                                       rtol=1e-4, atol=1e-4)

    print("KERNEL_OK")
</pallas_src>

<mosaic_0001>
module attributes {stable_mosaic.version = 11 : i64} {
  func.func @_expand_deconv_elu_kernel(%arg0: i32, %arg1: memref<1x16x16x4xf32, #tpu.memory_space<vmem>>, %arg2: memref<1x14x14x4xf32, #tpu.memory_space<vmem>>, %arg3: memref<9x16x8xf32, #tpu.memory_space<vmem>>, %arg4: memref<16x1xf32, #tpu.memory_space<vmem>>, %arg5: memref<16x256xf32, #tpu.memory_space<vmem>>, %arg6: memref<1x18x18x8xf32, #tpu.memory_space<vmem>>) attributes {dimension_semantics = [#tpu.dimension_semantics<parallel>], iteration_bounds = array<i64: 2>, scalar_prefetch = 0 : i64, scratch_operands = 1 : i64, tpu.core_type = #tpu.core_type<tc>, window_params = [{transform_indices = @transform_0, window_bounds = array<i64: 1, 16, 16, 4>}, {transform_indices = @transform_1, window_bounds = array<i64: 1, 14, 14, 4>}, {pipeline_mode = #tpu.pipeline_mode<synchronous>, transform_indices = @transform_2, window_bounds = array<i64: 9, 16, 8>}, {pipeline_mode = #tpu.pipeline_mode<synchronous>, transform_indices = @transform_3, window_bounds = array<i64: 16, 1>}, {transform_indices = @transform_4, window_bounds = array<i64: 16, 256>}]} {
    %cst = arith.constant 0.000000e+00 : f32
    %0 = vector.broadcast %cst : f32 to vector<1x2x18x8xf32>
    %c0 = arith.constant 0 : index
    %c0_0 = arith.constant 0 : index
    %c0_1 = arith.constant 0 : index
    %c0_2 = arith.constant 0 : index
    %1 = vector.load %arg6[%c0, %c0_0, %c0_1, %c0_2] : memref<1x18x18x8xf32, #tpu.memory_space<vmem>>, vector<1x2x18x8xf32>
    tpu.vector_store %arg6[%c0, %c0_0, %c0_1, %c0_2], %0 {strides = array<i32>} : memref<1x18x18x8xf32, #tpu.memory_space<vmem>>, vector<1x2x18x8xf32>,
    %cst_3 = arith.constant 0.000000e+00 : f32
    %2 = vector.broadcast %cst_3 : f32 to vector<1x2x18x8xf32>
    %c0_4 = arith.constant 0 : index
    %c16 = arith.constant 16 : index
    %c0_5 = arith.constant 0 : index
    %c0_6 = arith.constant 0 : index
    %3 = vector.load %arg6[%c0_4, %c16, %c0_5, %c0_6] : memref<1x18x18x8xf32, #tpu.memory_space<vmem>>, vector<1x2x18x8xf32>
    tpu.vector_store %arg6[%c0_4, %c16, %c0_5, %c0_6], %2 {strides = array<i32>} : memref<1x18x18x8xf32, #tpu.memory_space<vmem>>, vector<1x2x18x8xf32>,
    %cst_7 = arith.constant 0.000000e+00 : f32
    %4 = vector.broadcast %cst_7 : f32 to vector<1x14x2x8xf32>
    %c0_8 = arith.constant 0 : index
    %c2 = arith.constant 2 : index
    %c0_9 = arith.constant 0 : index
    %c0_10 = arith.constant 0 : index
    %5 = vector.load %arg6[%c0_8, %c2, %c0_9, %c0_10] : memref<1x18x18x8xf32, #tpu.memory_space<vmem>>, vector<1x14x2x8xf32>
    tpu.vector_store %arg6[%c0_8, %c2, %c0_9, %c0_10], %4 {strides = array<i32>} : memref<1x18x18x8xf32, #tpu.memory_space<vmem>>, vector<1x14x2x8xf32>,
    %cst_11 = arith.constant 0.000000e+00 : f32
    %6 = vector.broadcast %cst_11 : f32 to vector<1x14x2x8xf32>
    %c0_12 = arith.constant 0 : index
    %c2_13 = arith.constant 2 : index
    %c16_14 = arith.constant 16 : index
    %c0_15 = arith.constant 0 : index
    %7 = vector.load %arg6[%c0_12, %c2_13, %c16_14, %c0_15] : memref<1x18x18x8xf32, #tpu.memory_space<vmem>>, vector<1x14x2x8xf32>
    tpu.vector_store %arg6[%c0_12, %c2_13, %c16_14, %c0_15], %6 {strides = array<i32>} : memref<1x18x18x8xf32, #tpu.memory_space<vmem>>, vector<1x14x2x8xf32>,
    %c0_16 = arith.constant 0 : index
    %c0_17 = arith.constant 0 : index
    %c0_18 = arith.constant 0 : index
    %c0_19 = arith.constant 0 : index
    %8 = vector.load %arg2[%c0_16, %c0_17, %c0_18, %c0_19] : memref<1x14x14x4xf32, #tpu.memory_space<vmem>>, vector<1x14x14x4xf32>
    %c0_20 = arith.constant 0 : index
    %c2_21 = arith.constant 2 : index
    %c2_22 = arith.constant 2 : index
    %c0_23 = arith.constant 0 : index
    %9 = vector.load %arg6[%c0_20, %c2_21, %c2_22, %c0_23] : memref<1x18x18x8xf32, #tpu.memory_space<vmem>>, vector<1x14x14x4xf32>
    tpu.vector_store %arg6[%c0_20, %c2_21, %c2_22, %c0_23], %8 {strides = array<i32>} : memref<1x18x18x8xf32, #tpu.memory_space<vmem>>, vector<1x14x14x4xf32>,
    %c0_24 = arith.constant 0 : index
    %c0_25 = arith.constant 0 : index
    %c0_26 = arith.constant 0 : index
    %c0_27 = arith.constant 0 : index
    %10 = vector.load %arg1[%c0_24, %c0_25, %c0_26, %c0_27] : memref<1x16x16x4xf32, #tpu.memory_space<vmem>>, vector<1x16x16x4xf32>
    %c0_28 = arith.constant 0 : index
    %c1 = arith.constant 1 : index
    %c1_29 = arith.constant 1 : index
    %c4 = arith.constant 4 : index
    %11 = vector.load %arg6[%c0_28, %c1, %c1_29, %c4] : memref<1x18x18x8xf32, #tpu.memory_space<vmem>>, vector<1x16x16x4xf32>
    tpu.vector_store %arg6[%c0_28, %c1, %c1_29, %c4], %10 {strides = array<i32>} : memref<1x18x18x8xf32, #tpu.memory_space<vmem>>, vector<1x16x16x4xf32>,
    %cst_30 = arith.constant 0.000000e+00 : f32
    %12 = vector.broadcast %cst_30 : f32 to vector<16x256xf32>
    %c0_31 = arith.constant 0 : index
    %c0_32 = arith.constant 0 : index
    %c0_33 = arith.constant 0 : index
    %c0_34 = arith.constant 0 : index
    %13 = vector.load %arg6[%c0_31, %c0_32, %c0_33, %c0_34] : memref<1x18x18x8xf32, #tpu.memory_space<vmem>>, vector<1x16x16x8xf32>
    %14 = vector.shape_cast %13 : vector<1x16x16x8xf32> to vector<256x8xf32>
    %c0_35 = arith.constant 0 : index
    %c0_36 = arith.constant 0 : index
    %c0_37 = arith.constant 0 : index
    %15 = vector.load %arg3[%c0_35, %c0_36, %c0_37] : memref<9x16x8xf32, #tpu.memory_space<vmem>>, vector<1x16x8xf32>
    %16 = vector.shape_cast %15 : vector<1x16x8xf32> to vector<16x8xf32>
    %cst_38 = arith.constant dense<0.000000e+00> : vector<16x256xf32>
    %17 = tpu.matmul %16, %14, %cst_38 {dimension_numbers = #tpu.dot_dimension_numbers<[1], [1], [0], [0], [0, 0, 1, 0], [], []>} : vector<16x8xf32>, vector<256x8xf32>, vector<16x256xf32> -> vector<16x256xf32>
    %18 = arith.addf %12, %17 : vector<16x256xf32>
    %c0_39 = arith.constant 0 : index
    %c0_40 = arith.constant 0 : index
    %c1_41 = arith.constant 1 : index
    %c0_42 = arith.constant 0 : index
    %19 = vector.load %arg6[%c0_39, %c0_40, %c1_41, %c0_42] : memref<1x18x18x8xf32, #tpu.memory_space<vmem>>, vector<1x16x16x8xf32>
    %20 = vector.shape_cast %19 : vector<1x16x16x8xf32> to vector<256x8xf32>
    %c1_43 = arith.constant 1 : index
    %c0_44 = arith.constant 0 : index
    %c0_45 = arith.constant 0 : index
    %21 = vector.load %arg3[%c1_43, %c0_44, %c0_45] : memref<9x16x8xf32, #tpu.memory_space<vmem>>, vector<1x16x8xf32>
    %22 = vector.shape_cast %21 : vector<1x16x8xf32> to vector<16x8xf32>
    %cst_46 = arith.constant dense<0.000000e+00> : vector<16x256xf32>
    %23 = tpu.matmul %22, %20, %cst_46 {dimension_numbers = #tpu.dot_dimension_numbers<[1], [1], [0], [0], [0, 0, 1, 0], [], []>} : vector<16x8xf32>, vector<256x8xf32>, vector<16x256xf32> -> vector<16x256xf32>
    %24 = arith.addf %18, %23 : vector<16x256xf32>
    %c0_47 = arith.constant 0 : index
    %c0_48 = arith.constant 0 : index
    %c2_49 = arith.constant 2 : index
    %c0_50 = arith.constant 0 : index
    %25 = vector.load %arg6[%c0_47, %c0_48, %c2_49, %c0_50] : memref<1x18x18x8xf32, #tpu.memory_space<vmem>>, vector<1x16x16x8xf32>
    %26 = vector.shape_cast %25 : vector<1x16x16x8xf32> to vector<256x8xf32>
    %c2_51 = arith.constant 2 : index
    %c0_52 = arith.constant 0 : index
    %c0_53 = arith.constant 0 : index
    %27 = vector.load %arg3[%c2_51, %c0_52, %c0_53] : memref<9x16x8xf32, #tpu.memory_space<vmem>>, vector<1x16x8xf32>
    %28 = vector.shape_cast %27 : vector<1x16x8xf32> to vector<16x8xf32>
    %cst_54 = arith.constant dense<0.000000e+00> : vector<16x256xf32>
    %29 = tpu.matmul %28, %26, %cst_54 {dimension_numbers = #tpu.dot_dimension_numbers<[1], [1], [0], [0], [0, 0, 1, 0], [], []>} : vector<16x8xf32>, vector<256x8xf32>, vector<16x256xf32> -> vector<16x256xf32>
    %30 = arith.addf %24, %29 : vector<16x256xf32>
    %c0_55 = arith.constant 0 : index
    %c1_56 = arith.constant 1 : index
    %c0_57 = arith.constant 0 : index
    %c0_58 = arith.constant 0 : index
    %31 = vector.load %arg6[%c0_55, %c1_56, %c0_57, %c0_58] : memref<1x18x18x8xf32, #tpu.memory_space<vmem>>, vector<1x16x16x8xf32>
    %32 = vector.shape_cast %31 : vector<1x16x16x8xf32> to vector<256x8xf32>
    %c3 = arith.constant 3 : index
    %c0_59 = arith.constant 0 : index
    %c0_60 = arith.constant 0 : index
    %33 = vector.load %arg3[%c3, %c0_59, %c0_60] : memref<9x16x8xf32, #tpu.memory_space<vmem>>, vector<1x16x8xf32>
    %34 = vector.shape_cast %33 : vector<1x16x8xf32> to vector<16x8xf32>
    %cst_61 = arith.constant dense<0.000000e+00> : vector<16x256xf32>
    %35 = tpu.matmul %34, %32, %cst_61 {dimension_numbers = #tpu.dot_dimension_numbers<[1], [1], [0], [0], [0, 0, 1, 0], [], []>} : vector<16x8xf32>, vector<256x8xf32>, vector<16x256xf32> -> vector<16x256xf32>
    %36 = arith.addf %30, %35 : vector<16x256xf32>
    %c0_62 = arith.constant 0 : index
    %c1_63 = arith.constant 1 : index
    %c1_64 = arith.constant 1 : index
    %c0_65 = arith.constant 0 : index
    %37 = vector.load %arg6[%c0_62, %c1_63, %c1_64, %c0_65] : memref<1x18x18x8xf32, #tpu.memory_space<vmem>>, vector<1x16x16x8xf32>
    %38 = vector.shape_cast %37 : vector<1x16x16x8xf32> to vector<256x8xf32>
    %c4_66 = arith.constant 4 : index
    %c0_67 = arith.constant 0 : index
    %c0_68 = arith.constant 0 : index
    %39 = vector.load %arg3[%c4_66, %c0_67, %c0_68] : memref<9x16x8xf32, #tpu.memory_space<vmem>>, vector<1x16x8xf32>
    %40 = vector.shape_cast %39 : vector<1x16x8xf32> to vector<16x8xf32>
    %cst_69 = arith.constant dense<0.000000e+00> : vector<16x256xf32>
    %41 = tpu.matmul %40, %38, %cst_69 {dimension_numbers = #tpu.dot_dimension_numbers<[1], [1], [0], [0], [0, 0, 1, 0], [], []>} : vector<16x8xf32>, vector<256x8xf32>, vector<16x256xf32> -> vector<16x256xf32>
    %42 = arith.addf %36, %41 : vector<16x256xf32>
    %c0_70 = arith.constant 0 : index
    %c1_71 = arith.constant 1 : index
    %c2_72 = arith.constant 2 : index
    %c0_73 = arith.constant 0 : index
    %43 = vector.load %arg6[%c0_70, %c1_71, %c2_72, %c0_73] : memref<1x18x18x8xf32, #tpu.memory_space<vmem>>, vector<1x16x16x8xf32>
    %44 = vector.shape_cast %43 : vector<1x16x16x8xf32> to vector<256x8xf32>
    %c5 = arith.constant 5 : index
    %c0_74 = arith.constant 0 : index
    %c0_75 = arith.constant 0 : index
    %45 = vector.load %arg3[%c5, %c0_74, %c0_75] : memref<9x16x8xf32, #tpu.memory_space<vmem>>, vector<1x16x8xf32>
    %46 = vector.shape_cast %45 : vector<1x16x8xf32> to vector<16x8xf32>
    %cst_76 = arith.constant dense<0.000000e+00> : vector<16x256xf32>
    %47 = tpu.matmul %46, %44, %cst_76 {dimension_numbers = #tpu.dot_dimension_numbers<[1], [1], [0], [0], [0, 0, 1, 0], [], []>} : vector<16x8xf32>, vector<256x8xf32>, vector<16x256xf32> -> vector<16x256xf32>
    %48 = arith.addf %42, %47 : vector<16x256xf32>
    %c0_77 = arith.constant 0 : index
    %c2_78 = arith.constant 2 : index
    %c0_79 = arith.constant 0 : index
    %c0_80 = arith.constant 0 : index
    %49 = vector.load %arg6[%c0_77, %c2_78, %c0_79, %c0_80] : memref<1x18x18x8xf32, #tpu.memory_space<vmem>>, vector<1x16x16x8xf32>
    %50 = vector.shape_cast %49 : vector<1x16x16x8xf32> to vector<256x8xf32>
    %c6 = arith.constant 6 : index
    %c0_81 = arith.constant 0 : index
    %c0_82 = arith.constant 0 : index
    %51 = vector.load %arg3[%c6, %c0_81, %c0_82] : memref<9x16x8xf32, #tpu.memory_space<vmem>>, vector<1x16x8xf32>
    %52 = vector.shape_cast %51 : vector<1x16x8xf32> to vector<16x8xf32>
    %cst_83 = arith.constant dense<0.000000e+00> : vector<16x256xf32>
    %53 = tpu.matmul %52, %50, %cst_83 {dimension_numbers = #tpu.dot_dimension_numbers<[1], [1], [0], [0], [0, 0, 1, 0], [], []>} : vector<16x8xf32>, vector<256x8xf32>, vector<16x256xf32> -> vector<16x256xf32>
    %54 = arith.addf %48, %53 : vector<16x256xf32>
    %c0_84 = arith.constant 0 : index
    %c2_85 = arith.constant 2 : index
    %c1_86 = arith.constant 1 : index
    %c0_87 = arith.constant 0 : index
    %55 = vector.load %arg6[%c0_84, %c2_85, %c1_86, %c0_87] : memref<1x18x18x8xf32, #tpu.memory_space<vmem>>, vector<1x16x16x8xf32>
    %56 = vector.shape_cast %55 : vector<1x16x16x8xf32> to vector<256x8xf32>
    %c7 = arith.constant 7 : index
    %c0_88 = arith.constant 0 : index
    %c0_89 = arith.constant 0 : index
    %57 = vector.load %arg3[%c7, %c0_88, %c0_89] : memref<9x16x8xf32, #tpu.memory_space<vmem>>, vector<1x16x8xf32>
    %58 = vector.shape_cast %57 : vector<1x16x8xf32> to vector<16x8xf32>
    %cst_90 = arith.constant dense<0.000000e+00> : vector<16x256xf32>
    %59 = tpu.matmul %58, %56, %cst_90 {dimension_numbers = #tpu.dot_dimension_numbers<[1], [1], [0], [0], [0, 0, 1, 0], [], []>} : vector<16x8xf32>, vector<256x8xf32>, vector<16x256xf32> -> vector<16x256xf32>
    %60 = arith.addf %54, %59 : vector<16x256xf32>
    %c0_91 = arith.constant 0 : index
    %c2_92 = arith.constant 2 : index
    %c2_93 = arith.constant 2 : index
    %c0_94 = arith.constant 0 : index
    %61 = vector.load %arg6[%c0_91, %c2_92, %c2_93, %c0_94] : memref<1x18x18x8xf32, #tpu.memory_space<vmem>>, vector<1x16x16x8xf32>
    %62 = vector.shape_cast %61 : vector<1x16x16x8xf32> to vector<256x8xf32>
    %c8 = arith.constant 8 : index
    %c0_95 = arith.constant 0 : index
    %c0_96 = arith.constant 0 : index
    %63 = vector.load %arg3[%c8, %c0_95, %c0_96] : memref<9x16x8xf32, #tpu.memory_space<vmem>>, vector<1x16x8xf32>
    %64 = vector.shape_cast %63 : vector<1x16x8xf32> to vector<16x8xf32>
    %cst_97 = arith.constant dense<0.000000e+00> : vector<16x256xf32>
    %65 = tpu.matmul %64, %62, %cst_97 {dimension_numbers = #tpu.dot_dimension_numbers<[1], [1], [0], [0], [0, 0, 1, 0], [], []>} : vector<16x8xf32>, vector<256x8xf32>, vector<16x256xf32> -> vector<16x256xf32>
    %66 = arith.addf %60, %65 : vector<16x256xf32>
    %c0_98 = arith.constant 0 : index
    %c0_99 = arith.constant 0 : index
    %67 = vector.load %arg4[%c0_98, %c0_99] : memref<16x1xf32, #tpu.memory_space<vmem>>, vector<16x1xf32>
    %68 = vector.broadcast %67 : vector<16x1xf32> to vector<16x256xf32>
    %69 = arith.addf %66, %68 : vector<16x256xf32>
    %cst_100 = arith.constant 0.000000e+00 : f32
    %70 = vector.broadcast %cst_100 : f32 to vector<16x256xf32>
    %71 = arith.minimumf %69, %70 : vector<16x256xf32>
    %cst_101 = arith.constant 0.000000e+00 : f32
    %72 = vector.broadcast %cst_101 : f32 to vector<16x256xf32>
    %73 = arith.cmpf ogt, %69, %72 : vector<16x256xf32>
    %74 = math.exp %71 : vector<16x256xf32>
    %cst_102 = arith.constant 1.000000e+00 : f32
    %75 = vector.broadcast %cst_102 : f32 to vector<16x256xf32>
    %76 = arith.subf %74, %75 : vector<16x256xf32>
    %77 = arith.select %73, %69, %76 : vector<16x256xi1>, vector<16x256xf32>
    %c0_103 = arith.constant 0 : index
    %c0_104 = arith.constant 0 : index
    %78 = vector.load %arg5[%c0_103, %c0_104] : memref<16x256xf32, #tpu.memory_space<vmem>>, vector<16x256xf32>
    tpu.vector_store %arg5[%c0_103, %c0_104], %77 {strides = array<i32>} : memref<16x256xf32, #tpu.memory_space<vmem>>, vector<16x256xf32>,
    return
  }
  func.func @transform_0(%arg0: i32) -> (i32, i32, i32, i32) {
    %c0_i32 = arith.constant 0 : i32
    %c0_i32_0 = arith.constant 0 : i32
    %c0_i32_1 = arith.constant 0 : i32
    %c0_i32_2 = arith.constant 0 : i32
    return %arg0, %c0_i32, %c0_i32_0, %c0_i32_1 : i32, i32, i32, i32
  }
  func.func @transform_1(%arg0: i32) -> (i32, i32, i32, i32) {
    %c0_i32 = arith.constant 0 : i32
    %c0_i32_0 = arith.constant 0 : i32
    %c0_i32_1 = arith.constant 0 : i32
    %c0_i32_2 = arith.constant 0 : i32
    return %arg0, %c0_i32, %c0_i32_0, %c0_i32_1 : i32, i32, i32, i32
  }
  func.func @transform_2(%arg0: i32) -> (i32, i32, i32) {
    %c0_i32 = arith.constant 0 : i32
    %c0_i32_0 = arith.constant 0 : i32
    %c0_i32_1 = arith.constant 0 : i32
    %c0_i32_2 = arith.constant 0 : i32
    return %c0_i32, %c0_i32_0, %c0_i32_1 : i32, i32, i32
  }
  func.func @transform_3(%arg0: i32) -> (i32, i32) {
    %c0_i32 = arith.constant 0 : i32
    %c0_i32_0 = arith.constant 0 : i32
    %c0_i32_1 = arith.constant 0 : i32
    return %c0_i32, %c0_i32_0 : i32, i32
  }
  func.func @transform_4(%arg0: i32) -> (i32, i32) {
    %c0_i32 = arith.constant 0 : i32
    %c0_i32_0 = arith.constant 0 : i32
    return %c0_i32, %arg0 : i32, i32
  }
}

</mosaic_0001>

<bundles_post_ra>
// kernel: tpu_custom_call.1
= control target key start
LH: loop header
LB: loop body
LE: loop exit
PB: predicated region body
PF: predicated region fallthrough
CT: control target
= control target key end

     0   :  { %9 = vsyncpa [#allocation4], 0  ;;  %s4876_s0 = inlined_call_operand.vmem [shape: f32[2,16,16,4], index: 0, kind: input, shape index: {}]   ;;  %s4877_s1 = inlined_call_operand.vmem [shape: f32[2,14,14,4], index: 1, kind: input, shape index: {}]   ;;  %s4878_s2 = inlined_call_operand.vmem [shape: f32[9,16,8], index: 2, kind: input, shape index: {}]   ;;  %s4879_s3 = inlined_call_operand.vmem [shape: f32[16,1], index: 3, kind: input, shape index: {}]   ;;  %s4880_s4 = inlined_call_operand.hbm [shape: f32[16,512], index: 4, kind: output, shape index: {}]  }
   0x1   :  { %11 = vsyncpa [#allocation4 + $0x1], 0  ;;  %s3895_s15 = smov 0   ;;  %s3897_s16 = smov 0  }
   0x2   :  { %s3899_s17 = smov 0   ;;  %s3901_s18 = smov 0  }
   0x3 LB: > { %s3916_s19 = sadd.s32 4294967295, %s3861_s18   ;;  %s2598_s20 = sadd.s32 4294967294, %s3861_s18   ;;  %s3861_s18 = sphi %s3901_s18, %s4888_s18   ;;  %s3857_s17 = sphi %s3899_s17, %s4887_s17   ;;  %s3853_s16 = sphi %s3897_s16, %s4886_s16   ;;  %s3849_s15 = sphi %s3895_s15, %s4885_s15  }
   0x4   : > { %s3920_s21 = sadd.s32 1, %s3861_s18   ;;  %s118_s22 = sadd.s32 1, %s3857_s17 }
   0x5   : > { %s115_s23 = ssub.s32 %s3861_s18, %s3920_s21  ;;  %p128_p0 = scmp.ne.s32.totalorder %s3857_s17, %s3853_s16 }
   0x6   : > { %p116_p1 = scmp.eq.s32.totalorder %s115_s23, 0  ;;  %p129_p2 = scmp.eq.s32.totalorder %s3916_s19, 1 }
   0x7   : > { %p134_p3 = scmp.ne.s32.totalorder %s3853_s16, %s3849_s15  ;;  %p135_p4 = scmp.eq.s32.totalorder %s2598_s20, 1 }
   0x8   : > { %s3931_s24 = scalar_select %p116_p1, %s3857_s17, %s118_s22  }
   0x9   : > { %p3933_p5 = por %p129_p2, %p128_p0  ;;  %p3937_p6 = por %p135_p4, %p134_p3 }
   0xa   : > { %p2601_p7 = scmp.ge.s32.totalorder %s3861_s18, 1  ;;  %p175_p8 = scmp.lt.s32.totalorder %s3861_s18, 3 }
   0xc   : > { %p176_p9 = pnand %p2601_p7, %p175_p8 }
   0xd   : > { %p206_p10 = scmp.lt.s32.totalorder (!%p176_p9), %s3916_s19, 1  ;;  %vm220_vm0 = vcmask (!%p176_p9), 58368   ;;  %v3863_v0 = vmov (!%p176_p9), 0.0   ;;  %vm217_vm1 = vcmask (!%p176_p9), 64512   ;;  %s3864_s6 = smov (!%p176_p9), 4   ;;  %vm289_vm2 = vcmask (!%p176_p9), 31744  }
   0xe   : > { %179 = sbr.rel (%p176_p9) target bundleno = 729 (0x2d9), region = 36  ;;  %240 = vst.msk [vmem:[#allocation2 + $0xd8] sm:$0x3] (!%p176_p9), %vm220_vm0, %v3863_v0  ;;  %221 = vst.msk [vmem:[#allocation2 + $0x10] sm:$0x3] (!%p176_p9), %vm220_vm0, %v3863_v0  ;;  %vm291_vm3 = vcmask (!%p176_p9), 29696  }
   0xf   : > { %224 = vst.msk [vmem:[#allocation2 + $0x28] sm:$0x3] (!%p176_p9), %vm220_vm0, %v3863_v0  ;;  %228 = vst.msk [vmem:[#allocation2 + $0x190] sm:$0x3] (!%p176_p9), %vm220_vm0, %v3863_v0  ;;  %v4120_v61 = vld [vmem:[%s4878_s2 + $0x10] sm:$0xff] (!%p176_p9)  ;;  %v4127_v62 = vld [vmem:[%s4878_s2 + $0x40] sm:$0xff] (!%p176_p9) }
  0x10   : > { %231 = vst.msk [vmem:[#allocation2 + $0x1a8] sm:$0x3] (!%p176_p9), %vm220_vm0, %v3863_v0  ;;  %233 = vst.msk [vmem:[#allocation2 + $0x30] sm:$0x3] (!%p176_p9), %vm220_vm0, %v3863_v0  ;;  %2971 = vmatprep.mubr.msk.f32.mxu1 (!%p176_p9), %vm217_vm1, %v4120_v61  ;;  %3115 = vmatprep.mubr.msk.f32.mxu0 (!%p176_p9), %vm217_vm1, %v4127_v62  ;;  %vm480_vm4 = vcmask (!%p176_p9), 64544   ;;  %s203_s23 = sand.u32 (!%p176_p9), 1, %s3853_s16  }
  0x11   : > { %234 = vst.msk [vmem:[#allocation2 + $0x48] sm:$0x3] (!%p176_p9), %vm220_vm0, %v3863_v0  ;;  %235 = vst.msk [vmem:[#allocation2 + $0x60] sm:$0x3] (!%p176_p9), %vm220_vm0, %v3863_v0  ;;  %s2938_s30 = sshll.u32 (!%p176_p9), %s3916_s19, 8  ;;  %s3866_s9 = smov (!%p176_p9), [#allocation3]  }
  0x12   : > { %236 = vst.msk [vmem:[#allocation2 + $0x78] sm:$0x3] (!%p176_p9), %vm220_vm0, %v3863_v0  ;;  %237 = vst.msk [vmem:[#allocation2 + $0x90] sm:$0x3] (!%p176_p9), %vm220_vm0, %v3863_v0 }
  0x13   : > { %238 = vst.msk [vmem:[#allocation2 + $0xa8] sm:$0x3] (!%p176_p9), %vm220_vm0, %v3863_v0  ;;  %239 = vst.msk [vmem:[#allocation2 + $0xc0] sm:$0x3] (!%p176_p9), %vm220_vm0, %v3863_v0 }
  0x14   : > { %241 = vst.msk [vmem:[#allocation2 + $0xf0] sm:$0x3] (!%p176_p9), %vm220_vm0, %v3863_v0  ;;  %242 = vst.msk [vmem:[#allocation2 + $0x108] sm:$0x3] (!%p176_p9), %vm220_vm0, %v3863_v0 }
  0x15   : > { %243 = vst.msk [vmem:[#allocation2 + $0x120] sm:$0x3] %vm220_vm0, %v3863_v0  ;;  %244 = vst.msk [vmem:[#allocation2 + $0x138] sm:$0x3] %vm220_vm0, %v3863_v0  ;;  %s207_s27 = scalar_select %p206_p10, %s3916_s19, 1 }
  0x16   : > { %245 = vst.msk [vmem:[#allocation2 + $0x150] sm:$0x3] %vm220_vm0, %v3863_v0  ;;  %246 = vst.msk [vmem:[#allocation2 + $0x168] sm:$0x3] %vm220_vm0, %v3863_v0  ;;  %s4833_s19 = scalar_lea.hbm %s4880_s4, %s2938_s30 }
  0x17   : > { %247 = vst.msk [vmem:[#allocation2 + $0x40] sm:$0x3] %vm220_vm0, %v3863_v0  ;;  %248 = vst.msk [vmem:[#allocation2 + $0x58] sm:$0x3] %vm220_vm0, %v3863_v0  ;;  %s2937_s28 = sshll.u32 %s207_s27, 8  ;;  %s3743_s7 = smul.u32 224, %s207_s27 }
  0x18   : > { %249 = vst.msk [vmem:[#allocation2 + $0x70] sm:$0x3] %vm220_vm0, %v3863_v0  ;;  %250 = vst.msk [vmem:[#allocation2 + $0x88] sm:$0x3] %vm220_vm0, %v3863_v0  ;;  %s3990_s5 = scalar_lea.vmem %s4876_s0, %s2937_s28  ;;  %s2602_s27 = sshll.u32 %s203_s23, 5 }
  0x19   : > { %251 = vst.msk [vmem:[#allocation2 + $0xa0] sm:$0x3] %vm220_vm0, %v3863_v0  ;;  %252 = vst.msk [vmem:[#allocation2 + $0xb8] sm:$0x3] %vm220_vm0, %v3863_v0  ;;  %v335_v1 = vld [vmem:[%s3990_s5 + $0x80] sm:$0xff]  ;;  %v333_v2 = vld [vmem:[%s3990_s5 + $0x70] sm:$0xff]  ;;  %s4005_s10 = scalar_lea.vmem %s4877_s1, %s3743_s7 }
  0x1a   : > { %253 = vst.msk [vmem:[#allocation2 + $0xd0] sm:$0x3] %vm220_vm0, %v3863_v0  ;;  %254 = vst.msk [vmem:[#allocation2 + $0xe8] sm:$0x3] %vm220_vm0, %v3863_v0  ;;  %415 = vrot.lane.b32.xlu1 %v335_v1, %s3864_s6  ;;  %411 = vrot.lane.b32.xlu0 %v333_v2, %s3864_s6  ;;  %v336_v3 = vld [vmem:[%s3990_s5 + $0x88] sm:$0xff]  ;;  %v334_v4 = vld [vmem:[%s3990_s5 + $0x78] sm:$0xff] }
  0x1b   : > { %255 = vst.msk [vmem:[#allocation2 + $0x100] sm:$0x3] %vm220_vm0, %v3863_v0  ;;  %256 = vst.msk [vmem:[#allocation2 + $0x118] sm:$0x3] %vm220_vm0, %v3863_v0  ;;  %v320_v5 = vld [vmem:[%s3990_s5 + $0x8] sm:$0xff]  ;;  %v319_v6 = vld [vmem:[%s3990_s5] sm:$0xff] }
  0x1c   : > { %257 = vst.msk [vmem:[#allocation2 + $0x130] sm:$0x3] %vm220_vm0, %v3863_v0  ;;  %258 = vst.msk [vmem:[#allocation2 + $0x148] sm:$0x3] %vm220_vm0, %v3863_v0  ;;  %v338_v7 = vld [vmem:[%s3990_s5 + $0x98] sm:$0xff]  ;;  %v337_v8 = vld [vmem:[%s3990_s5 + $0x90] sm:$0xff] }
  0x1d   : > { %259 = vst.msk [vmem:[#allocation2 + $0x160] sm:$0x3] %vm220_vm0, %v3863_v0  ;;  %260 = vst.msk [vmem:[#allocation2 + $0x178] sm:$0x3] %vm220_vm0, %v3863_v0  ;;  %v275_v9 = vld [vmem:[%s4005_s10 + $0x70] sm:$0xff]  ;;  %v322_v10 = vld [vmem:[%s3990_s5 + $0x18] sm:$0xff] }
  0x1e   : > { %223 = vst.msk [vmem:[#allocation2 + $0x20] sm:$0xff] %vm217_vm1, %v3863_v0  ;;  %218 = vst.msk [vmem:[#allocation2] sm:$0xff] %vm217_vm1, %v3863_v0  ;;  %417 = vrot.lane.b32.xlu1 %v336_v3, %s3864_s6  ;;  %413 = vrot.lane.b32.xlu0 %v334_v4, %s3864_s6  ;;  %v321_v11 = vld [vmem:[%s3990_s5 + $0x10] sm:$0xff]  ;;  %v273_v12 = vld [vmem:[%s4005_s10 + $0x60] sm:$0xff]  ;;  %s205_s28 = scalar_lea.vmem [#allocation3], %s2602_s27  ;;  %s4835_s7 = scalar_lea.sflag [#allocation4], %s203_s23 }
  0x1f   : > { %219 = vst.msk [vmem:[#allocation2 + $0x8] sm:$0xff] %vm217_vm1, %v3863_v0  ;;  %222 = vst.msk [vmem:[#allocation2 + $0x18] sm:$0xff] %vm217_vm1, %v3863_v0  ;;  %v276_v13 = vld [vmem:[%s4005_s10 + $0x78] sm:$0x3f]  ;;  %v274_v14 = vld [vmem:[%s4005_s10 + $0x68] sm:$0x3f] }
  0x20   : > { %226 = vst.msk [vmem:[#allocation2 + $0x180] sm:$0xff] %vm217_vm1, %v3863_v0  ;;  %227 = vst.msk [vmem:[#allocation2 + $0x188] sm:$0xff] %vm217_vm1, %v3863_v0  ;;  %v277_v15 = vld [vmem:[%s4005_s10 + $0x80] sm:$0xff]  ;;  %v278_v16 = vld [vmem:[%s4005_s10 + $0x88] sm:$0x3f]  ;;  %s2524_s29 = sshll.u32 %s205_s28, 4  ;;  %s4828_s29 = int_to_ptr.vmem [resolvable:$true] %s2524_s29 }
  0x21   : > { %229 = vst.msk [vmem:[#allocation2 + $0x198] sm:$0xff] %vm217_vm1, %v3863_v0  ;;  %230 = vst.msk [vmem:[#allocation2 + $0x1a0] sm:$0xff] %vm217_vm1, %v3863_v0  ;;  %v261_v17 = vld [vmem:[%s4005_s10] sm:$0xff]  ;;  %v262_v18 = vld [vmem:[%s4005_s10 + $0x8] sm:$0x3f]  ;;  %s3799_s8 = scalar_lea.vmem %s4828_s29, 512 }
  0x22   : > { %385 = vrot.lane.b32.xlu1 %v320_v5, %s3864_s6  ;;  %383 = vrot.lane.b32.xlu0 %v319_v6, %s3864_s6  ;;  %305 = vst.msk [vmem:[#allocation2 + $0xda] sm:$0xff] %vm289_vm2, %v275_v9  ;;  %303 = vst.msk [vmem:[#allocation2 + $0xc2] sm:$0xff] %vm289_vm2, %v273_v12  ;;  %v279_v19 = vld [vmem:[%s4005_s10 + $0x90] sm:$0xff]  ;;  %v280_v20 = vld [vmem:[%s4005_s10 + $0x98] sm:$0x3f]  ;;  %p3800_p11 = scmp.ne.s32.totalorder %s4828_s29, %s3799_s8 }
  0x23   : > { %306 = vst.msk [vmem:[#allocation2 + $0xe2] sm:$0x3f] %vm291_vm3, %v276_v13  ;;  %304 = vst.msk [vmem:[#allocation2 + $0xca] sm:$0x3f] %vm291_vm3, %v274_v14  ;;  %v263_v21 = vld [vmem:[%s4005_s10 + $0x10] sm:$0xff]  ;;  %v281_v23 = vld [vmem:[%s4005_s10 + $0xa0] sm:$0xff] }
  0x24   : > { %307 = vst.msk [vmem:[#allocation2 + $0xf2] sm:$0xff] %vm289_vm2, %v277_v15  ;;  %290 = vst.msk [vmem:[#allocation2 + $0x32] sm:$0xff] %vm289_vm2, %v261_v17  ;;  %v264_v22 = vld [vmem:[%s4005_s10 + $0x18] sm:$0x3f]  ;;  %v282_v24 = vld [vmem:[%s4005_s10 + $0xa8] sm:$0x3f]  ;;  %p3801_p12 = pnand %p3800_p11, %p3933_p5 }
  0x25   : > { %308 = vst.msk [vmem:[#allocation2 + $0xfa] sm:$0x3f] %vm291_vm3, %v278_v16  ;;  %292 = vst.msk [vmem:[#allocation2 + $0x3a] sm:$0x3f] %vm291_vm3, %v262_v18  ;;  %v340_v25 = vld [vmem:[%s3990_s5 + $0xa8] sm:$0xff]  ;;  %v339_v26 = vld [vmem:[%s3990_s5 + $0xa0] sm:$0xff] }
  0x26   : > { %421 = vrot.lane.b32.xlu1 %v338_v7, %s3864_s6  ;;  %419 = vrot.lane.b32.xlu0 %v337_v8, %s3864_s6  ;;  %309 = vst.msk [vmem:[#allocation2 + $0x10a] sm:$0xff] %vm289_vm2, %v279_v19  ;;  %293 = vst.msk [vmem:[#allocation2 + $0x4a] sm:$0xff] %vm289_vm2, %v263_v21  ;;  %v265_v27 = vld [vmem:[%s4005_s10 + $0x20] sm:$0xff]  ;;  %v266_v28 = vld [vmem:[%s4005_s10 + $0x28] sm:$0x3f]  ;;  %p3802_p13 = pneg %p3801_p12 }
  0x27   : > { %310 = vst.msk [vmem:[#allocation2 + $0x112] sm:$0x3f] %vm291_vm3, %v280_v20  ;;  %294 = vst.msk [vmem:[#allocation2 + $0x52] sm:$0x3f] %vm291_vm3, %v264_v22  ;;  %v324_v29 = vld [vmem:[%s3990_s5 + $0x28] sm:$0xff]  ;;  %v323_v30 = vld [vmem:[%s3990_s5 + $0x20] sm:$0xff] }
  0x28   : > { %311 = vst.msk [vmem:[#allocation2 + $0x122] sm:$0xff] %vm289_vm2, %v281_v23  ;;  %295 = vst.msk [vmem:[#allocation2 + $0x62] sm:$0xff] %vm289_vm2, %v265_v27  ;;  %v283_v31 = vld [vmem:[%s4005_s10 + $0xb0] sm:$0xff]  ;;  %v284_v32 = vld [vmem:[%s4005_s10 + $0xb8] sm:$0x3f] }
  0x29   : > { %312 = vst.msk [vmem:[#allocation2 + $0x12a] sm:$0x3f] %vm291_vm3, %v282_v24  ;;  %296 = vst.msk [vmem:[#allocation2 + $0x6a] sm:$0x3f] %vm291_vm3, %v266_v28  ;;  %v342_v33 = vld [vmem:[%s3990_s5 + $0xb8] sm:$0xff]  ;;  %v341_v34 = vld [vmem:[%s3990_s5 + $0xb0] sm:$0xff] }
  0x2a   : > { %389 = vrot.lane.b32.xlu1 %v322_v10, %s3864_s6  ;;  %387 = vrot.lane.b32.xlu0 %v321_v11, %s3864_s6  ;;  %313 = vst.msk [vmem:[#allocation2 + $0x13a] sm:$0xff] %vm289_vm2, %v283_v31  ;;  %v267_v35 = vld [vmem:[%s4005_s10 + $0x30] sm:$0xff]  ;;  %v268_v36 = vld [vmem:[%s4005_s10 + $0x38] sm:$0x3f]  ;;  %v547_v5 = vld [vmem:[#allocation2 + $0x1] sm:$0xff] }
  0x2b   : > { %314 = vst.msk [vmem:[#allocation2 + $0x142] sm:$0x3f] %vm291_vm3, %v284_v32  ;;  %298 = vst.msk [vmem:[#allocation2 + $0x82] sm:$0x3f] %vm291_vm3, %v268_v36  ;;  %v326_v37 = vld [vmem:[%s3990_s5 + $0x38] sm:$0xff]  ;;  %v325_v38 = vld [vmem:[%s3990_s5 + $0x30] sm:$0xff] }
  0x2c   : > { %297 = vst.msk [vmem:[#allocation2 + $0x7a] sm:$0xff] %vm289_vm2, %v267_v35  ;;  %v285_v39 = vld [vmem:[%s4005_s10 + $0xc0] sm:$0xff]  ;;  %v286_v40 = vld [vmem:[%s4005_s10 + $0xc8] sm:$0x3f]  ;;  %v287_v47 = vld [vmem:[%s4005_s10 + $0xd0] sm:$0xff] }
  0x2d   : > { %315 = vst.msk [vmem:[#allocation2 + $0x152] sm:$0xff] %vm289_vm2, %v285_v39  ;;  %v344_v41 = vld [vmem:[%s3990_s5 + $0xc8] sm:$0xff]  ;;  %v343_v42 = vld [vmem:[%s3990_s5 + $0xc0] sm:$0xff]  ;;  %v288_v48 = vld [vmem:[%s4005_s10 + $0xd8] sm:$0x3f] }
  0x2e   : > { %425 = vrot.lane.b32.xlu1 %v340_v25, %s3864_s6  ;;  %423 = vrot.lane.b32.xlu0 %v339_v26, %s3864_s6  ;;  %316 = vst.msk [vmem:[#allocation2 + $0x15a] sm:$0x3f] %vm291_vm3, %v286_v40  ;;  %v269_v43 = vld [vmem:[%s4005_s10 + $0x40] sm:$0xff]  ;;  %v270_v44 = vld [vmem:[%s4005_s10 + $0x48] sm:$0x3f]  ;;  %vm4139_vm5 = vmpackc.low %vm217_vm1, %vm217_vm1 }
  0x2f   : > { %299 = vst.msk [vmem:[#allocation2 + $0x92] sm:$0xff] %vm289_vm2, %v269_v43  ;;  %v328_v45 = vld [vmem:[%s3990_s5 + $0x48] sm:$0xff]  ;;  %v327_v46 = vld [vmem:[%s3990_s5 + $0x40] sm:$0xff]  ;;  %317 = vst.msk [vmem:[#allocation2 + $0x16a] sm:$0xff] %vm289_vm2, %v287_v47 }
  0x30   : > { %300 = vst.msk [vmem:[#allocation2 + $0x9a] sm:$0x3f] %vm291_vm3, %v270_v44  ;;  %318 = vst.msk [vmem:[#allocation2 + $0x172] sm:$0x3f] %vm291_vm3, %v288_v48  ;;  %v346_v49 = vld [vmem:[%s3990_s5 + $0xd8] sm:$0xff]  ;;  %v345_v50 = vld [vmem:[%s3990_s5 + $0xd0] sm:$0xff] }
  0x31   : > { %v271_v51 = vld [vmem:[%s4005_s10 + $0x50] sm:$0xff]  ;;  %v272_v52 = vld [vmem:[%s4005_s10 + $0x58] sm:$0x3f]  ;;  %v348_v55 = vld [vmem:[%s3990_s5 + $0xe8] sm:$0xff]  ;;  %s3803_s10 = sshll.u32 %s3866_s9, 4  ;;  %s3804_s10 = int_to_ptr.vmem [resolvable:$false] %s3803_s10 }
  0x32   : > { %393 = vrot.lane.b32.xlu1 %v324_v29, %s3864_s6  ;;  %391 = vrot.lane.b32.xlu0 %v323_v30, %s3864_s6  ;;  %301 = vst.msk [vmem:[#allocation2 + $0xaa] sm:$0xff] %vm289_vm2, %v271_v51  ;;  %v330_v53 = vld [vmem:[%s3990_s5 + $0x58] sm:$0xff]  ;;  %v329_v54 = vld [vmem:[%s3990_s5 + $0x50] sm:$0xff]  ;;  %s3805_s11 = scalar_lea.vmem %s3804_s10, 1024  ;;  %p3806_p0 = scmp.lt.s32.totalorder %s4828_s29, %s3804_s10 }
  0x33   : > { %302 = vst.msk [vmem:[#allocation2 + $0xb2] sm:$0x3f] %vm291_vm3, %v272_v52  ;;  %v347_v56 = vld [vmem:[%s3990_s5 + $0xe0] sm:$0xff]  ;;  %v332_v57 = vld [vmem:[%s3990_s5 + $0x68] sm:$0xff]  ;;  %v350_v59 = vld [vmem:[%s3990_s5 + $0xf8] sm:$0xff]  ;;  %p3807_p1 = scmp.lt.s32.totalorder %s3805_s11, %s3799_s8 }
  0x34   : > { %v331_v58 = vld [vmem:[%s3990_s5 + $0x60] sm:$0xff]  ;;  %v349_v60 = vld [vmem:[%s3990_s5 + $0xf0] sm:$0xff] }
  0x35   : > { %v548_v6 = vld [vmem:[#allocation2 + $0x9] sm:$0xff]  ;;  %p3808_p2 = por %p3807_p1, %p3806_p0 }
  0x36   : > { %429 = vrot.lane.b32.xlu1 %v342_v33, %s3864_s6  ;;  %427 = vrot.lane.b32.xlu0 %v341_v34, %s3864_s6  ;;  %v3266_v14 = vpack.c.bf16 %v548_v6, %v547_v5 }
  0x37   : > { %p3809_p3 = pnand %p3808_p2, %p3802_p13 }
  0x3a   : > { %397 = vrot.lane.b32.xlu1 %v326_v37, %s3864_s6  ;;  %395 = vrot.lane.b32.xlu0 %v325_v38, %s3864_s6 }
  0x3e   : > { %433 = vrot.lane.b32.xlu1 %v344_v41, %s3864_s6  ;;  %431 = vrot.lane.b32.xlu0 %v343_v42, %s3864_s6 }
  0x42   : > { %401 = vrot.lane.b32.xlu1 %v328_v45, %s3864_s6  ;;  %399 = vrot.lane.b32.xlu0 %v327_v46, %s3864_s6 }
  0x46   : > { %437 = vrot.lane.b32.xlu1 %v346_v49, %s3864_s6  ;;  %435 = vrot.lane.b32.xlu0 %v345_v50, %s3864_s6 }
  0x4a   : > { %405 = vrot.lane.b32.xlu1 %v330_v53, %s3864_s6  ;;  %403 = vrot.lane.b32.xlu0 %v329_v54, %s3864_s6 }
  0x4e   : > { %441 = vrot.lane.b32.xlu1 %v348_v55, %s3864_s6  ;;  %439 = vrot.lane.b32.xlu0 %v347_v56, %s3864_s6 }
  0x52   : > { %409 = vrot.lane.b32.xlu1 %v332_v57, %s3864_s6  ;;  %407 = vrot.lane.b32.xlu0 %v331_v58, %s3864_s6 }
  0x56   : > { %445 = vrot.lane.b32.xlu1 %v350_v59, %s3864_s6  ;;  %443 = vrot.lane.b32.xlu0 %v349_v60, %s3864_s6 }
  0x8c   : > { %v416_v63 = vpop.permute.xlu1 %415  ;;  %v412_v0 = vpop.permute.xlu0 %411 }
  0x8d   : > { %497 = vst.msk [vmem:[#allocation2 + $0xd9] sm:$0xff] %vm480_vm4, %v416_v63  ;;  %495 = vst.msk [vmem:[#allocation2 + $0xc1] sm:$0xff] %vm480_vm4, %v412_v0 }
  0x90   : > { %v418_v1 = vpop.permute.xlu1 %417  ;;  %v414_v2 = vpop.permute.xlu0 %413 }
  0x91   : > { %498 = vst.msk [vmem:[#allocation2 + $0xe1] sm:$0xff] %vm480_vm4, %v418_v1  ;;  %496 = vst.msk [vmem:[#allocation2 + $0xc9] sm:$0xff] %vm480_vm4, %v414_v2 }
  0x94   : > { %v386_v3 = vpop.permute.xlu1 %385  ;;  %v384_v4 = vpop.permute.xlu0 %383  ;;  %v563_v7 = vld [vmem:[#allocation2 + $0xc1] sm:$0xff]  ;;  %v1392_v12 = vld [vmem:[#allocation2 + $0xd9] sm:$0xff] }
  0x95   : > { %482 = vst.msk [vmem:[#allocation2 + $0x21] sm:$0xff] %vm480_vm4, %v386_v3  ;;  %481 = vst.msk [vmem:[#allocation2 + $0x19] sm:$0xff] %vm480_vm4, %v384_v4 }
  0x98   : > { %v422_v9 = vpop.permute.xlu1 %421  ;;  %v420_v10 = vpop.permute.xlu0 %419  ;;  %v564_v11 = vld [vmem:[#allocation2 + $0xc9] sm:$0xff]  ;;  %v1393_v13 = vld [vmem:[#allocation2 + $0xe1] sm:$0xff] }
  0x99   : > { %500 = vst.msk [vmem:[#allocation2 + $0xf9] sm:$0xff] %vm480_vm4, %v422_v9  ;;  %499 = vst.msk [vmem:[#allocation2 + $0xf1] sm:$0xff] %vm480_vm4, %v420_v10  ;;  %v4145_v15 = vpack.c.bf16 %v564_v11, %v563_v7  ;;  %v3455_v16 = vpack.c.bf16 %v1393_v13, %v1392_v12 }
  0x9b   : > { %3265 = vmatprep.subr.msk.bf16.mxu1 %vm4139_vm5, %v4145_v15  ;;  %3457 = vmatprep.subr.msk.bf16.mxu0 %vm4139_vm5, %v3455_v16 }
  0x9c   : > { %3268 = vmatpush3.bf16.xpose.msk.msra.mxu1 %vm4139_vm5, %v3266_v14  ;;  %v390_v17 = vpop.permute.xlu1 %389  ;;  %v388_v18 = vpop.permute.xlu0 %387  ;;  %v1376_v19 = vld [vmem:[#allocation2 + $0x19] sm:$0xff]  ;;  %v1377_v20 = vld [vmem:[#allocation2 + $0x21] sm:$0xff] }
  0x9d   : > { %484 = vst.msk [vmem:[#allocation2 + $0x39] sm:$0xff] %vm480_vm4, %v390_v17  ;;  %483 = vst.msk [vmem:[#allocation2 + $0x31] sm:$0xff] %vm480_vm4, %v388_v18  ;;  %3271 = vmatprep.subr.msk.bf16.mxu1 %vm4139_vm5, %v3455_v16  ;;  %v3458_v21 = vpack.c.bf16 %v1377_v20, %v1376_v19  ;;  %v530_v20 = vld [vmem:[#allocation2 + $0xc8] sm:$0xff] }
  0x9f   : > { %3460 = vmatpush3.bf16.xpose.msk.msra.mxu0 %vm4139_vm5, %v3458_v21 }
  0xa0   : > { %v426_v22 = vpop.permute.xlu1 %425  ;;  %v424_v23 = vpop.permute.xlu0 %423  ;;  %v1394_v24 = vld [vmem:[#allocation2 + $0xf1] sm:$0xff]  ;;  %v1395_v25 = vld [vmem:[#allocation2 + $0xf9] sm:$0xff] }
  0xa1   : > { %502 = vst.msk [vmem:[#allocation2 + $0x111] sm:$0xff] %vm480_vm4, %v426_v22  ;;  %501 = vst.msk [vmem:[#allocation2 + $0x109] sm:$0xff] %vm480_vm4, %v424_v23  ;;  %v4162_v26 = vpack.c.bf16 %v1395_v25, %v1394_v24  ;;  %v529_v24 = vld [vmem:[#allocation2 + $0xc0] sm:$0xff] }
  0xa2   : > { %v4279_v25 = vpack.c.bf16 %v530_v20, %v529_v24 }
  0xa3   : > { %3463 = vmatprep.subr.msk.bf16.mxu0 %vm4139_vm5, %v4162_v26 }
  0xa4   : > { %v394_v27 = vpop.permute.xlu1 %393  ;;  %3274 = vmatpush3.bf16.xpose.msk.msra.mxu1 %vm4139_vm5, %v3458_v21  ;;  %v392_v28 = vpop.permute.xlu0 %391  ;;  %v1378_v29 = vld [vmem:[#allocation2 + $0x31] sm:$0xff]  ;;  %v1379_v30 = vld [vmem:[#allocation2 + $0x39] sm:$0xff] }
  0xa5   : > { %486 = vst.msk [vmem:[#allocation2 + $0x51] sm:$0xff] %vm480_vm4, %v394_v27  ;;  %485 = vst.msk [vmem:[#allocation2 + $0x49] sm:$0xff] %vm480_vm4, %v392_v28  ;;  %3277 = vmatprep.subr.msk.bf16.mxu1 %vm4139_vm5, %v4162_v26  ;;  %v4174_v31 = vpack.c.bf16 %v1379_v30, %v1378_v29  ;;  %v1610_v27 = vld [vmem:[#allocation2 + $0xda] sm:$0xff]  ;;  %v1611_v28 = vld [vmem:[#allocation2 + $0xe2] sm:$0xff] }
  0xa6   : > { %v513_v29 = vld [vmem:[#allocation2] sm:$0xff]  ;;  %v514_v30 = vld [vmem:[#allocation2 + $0x8] sm:$0xff] }
  0xa7   : > { %3466 = vmatpush3.bf16.xpose.msk.msra.mxu0 %vm4139_vm5, %v4174_v31 }
  0xa8   : > { %v430_v32 = vpop.permute.xlu1 %429  ;;  %v428_v33 = vpop.permute.xlu0 %427  ;;  %v1396_v34 = vld [vmem:[#allocation2 + $0x109] sm:$0xff]  ;;  %v1397_v35 = vld [vmem:[#allocation2 + $0x111] sm:$0xff] }
  0xa9   : > { %504 = vst.msk [vmem:[#allocation2 + $0x129] sm:$0xff] %vm480_vm4, %v430_v32  ;;  %503 = vst.msk [vmem:[#allocation2 + $0x121] sm:$0xff] %vm480_vm4, %v428_v33  ;;  %v4181_v36 = vpack.c.bf16 %v1397_v35, %v1396_v34  ;;  %v4290_v32 = vpack.c.bf16 %v1611_v28, %v1610_v27  ;;  %v3314_v33 = vpack.c.bf16 %v514_v30, %v513_v29  ;;  %v532_v34 = vld [vmem:[#allocation2 + $0xe0] sm:$0xff]  ;;  %v2607_v35 = vld [vmem:[%s4878_s2 + $0x18] sm:$0xff] }
  0xab   : > { %3469 = vmatprep.subr.msk.bf16.mxu0 %vm4139_vm5, %v4181_v36 }
  0xac   : > { %v398_v37 = vpop.permute.xlu1 %397  ;;  %3280 = vmatpush3.bf16.xpose.msk.msra.mxu1 %vm4139_vm5, %v4174_v31  ;;  %v396_v38 = vpop.permute.xlu0 %395  ;;  %v1380_v39 = vld [vmem:[#allocation2 + $0x49] sm:$0xff]  ;;  %v1381_v40 = vld [vmem:[#allocation2 + $0x51] sm:$0xff] }
  0xad   : > { %488 = vst.msk [vmem:[#allocation2 + $0x69] sm:$0xff] %vm480_vm4, %v398_v37  ;;  %487 = vst.msk [vmem:[#allocation2 + $0x61] sm:$0xff] %vm480_vm4, %v396_v38  ;;  %3283 = vmatprep.subr.msk.bf16.mxu1 %vm4139_vm5, %v4181_v36  ;;  %v4194_v41 = vpack.c.bf16 %v1381_v40, %v1380_v39  ;;  %v531_v37 = vld [vmem:[#allocation2 + $0xd8] sm:$0xff]  ;;  %v1595_v39 = vld [vmem:[#allocation2 + $0x22] sm:$0xff] }
  0xae   : > { %v1594_v38 = vld [vmem:[#allocation2 + $0x1a] sm:$0xff]  ;;  %v4303_v40 = vpack.c.bf16 %v532_v34, %v531_v37 }
  0xaf   : > { %3472 = vmatpush3.bf16.xpose.msk.msra.mxu0 %vm4139_vm5, %v4194_v41 }
  0xb0   : > { %v434_v42 = vpop.permute.xlu1 %433  ;;  %v432_v43 = vpop.permute.xlu0 %431  ;;  %v1398_v44 = vld [vmem:[#allocation2 + $0x121] sm:$0xff]  ;;  %v1399_v45 = vld [vmem:[#allocation2 + $0x129] sm:$0xff] }
  0xb1   : > { %506 = vst.msk [vmem:[#allocation2 + $0x141] sm:$0xff] %vm480_vm4, %v434_v42  ;;  %505 = vst.msk [vmem:[#allocation2 + $0x139] sm:$0xff] %vm480_vm4, %v432_v43  ;;  %v4201_v46 = vpack.c.bf16 %v1399_v45, %v1398_v44  ;;  %v1612_v42 = vld [vmem:[#allocation2 + $0xf2] sm:$0xff]  ;;  %v4311_v43 = vpack.c.bf16 %v1595_v39, %v1594_v38  ;;  %v2749_v44 = vld [vmem:[%s4878_s2 + $0x48] sm:$0xff] }
  0xb2   : > { %v4323_v45 = vld [vmem:[%s4878_s2] sm:$0xff] }
  0xb3   : > { %3475 = vmatprep.subr.msk.bf16.mxu0 %vm4139_vm5, %v4201_v46  ;;  %v537_v20 = vld [vmem:[#allocation2 + $0x120] sm:$0xff] }
  0xb4   : > { %v402_v47 = vpop.permute.xlu1 %401  ;;  %3286 = vmatpush3.bf16.xpose.msk.msra.mxu1 %vm4139_vm5, %v4194_v41  ;;  %v400_v48 = vpop.permute.xlu0 %399  ;;  %v1382_v49 = vld [vmem:[#allocation2 + $0x61] sm:$0xff]  ;;  %v1383_v50 = vld [vmem:[#allocation2 + $0x69] sm:$0xff] }
  0xb5   : > { %490 = vst.msk [vmem:[#allocation2 + $0x81] sm:$0xff] %vm480_vm4, %v402_v47  ;;  %489 = vst.msk [vmem:[#allocation2 + $0x79] sm:$0xff] %vm480_vm4, %v400_v48  ;;  %3289 = vmatprep.subr.msk.bf16.mxu1 %vm4139_vm5, %v4201_v46  ;;  %v4214_v51 = vpack.c.bf16 %v1383_v50, %v1382_v49  ;;  %v515_v47 = vld [vmem:[#allocation2 + $0x18] sm:$0xff]  ;;  %v516_v48 = vld [vmem:[#allocation2 + $0x20] sm:$0xff] }
  0xb6   : > { %v534_v49 = vld [vmem:[#allocation2 + $0xf8] sm:$0xff]  ;;  %v4336_v50 = vld [vmem:[%s4878_s2 + $0x50] sm:$0xff]  ;;  %v1600_v24 = vld [vmem:[#allocation2 + $0x62] sm:$0xff] }
  0xb7   : > { %3478 = vmatpush3.bf16.xpose.msk.msra.mxu0 %vm4139_vm5, %v4214_v51  ;;  %v1601_v27 = vld [vmem:[#allocation2 + $0x6a] sm:$0xff] }
  0xb8   : > { %v438_v52 = vpop.permute.xlu1 %437  ;;  %v436_v53 = vpop.permute.xlu0 %435  ;;  %v1400_v54 = vld [vmem:[#allocation2 + $0x139] sm:$0xff]  ;;  %v1401_v55 = vld [vmem:[#allocation2 + $0x141] sm:$0xff] }
  0xb9   : > { %508 = vst.msk [vmem:[#allocation2 + $0x159] sm:$0xff] %vm480_vm4, %v438_v52  ;;  %507 = vst.msk [vmem:[#allocation2 + $0x151] sm:$0xff] %vm480_vm4, %v436_v53  ;;  %v4221_v56 = vpack.c.bf16 %v1401_v55, %v1400_v54  ;;  %v4340_v52 = vpack.c.bf16 %v516_v48, %v515_v47  ;;  %v1596_v53 = vld [vmem:[#allocation2 + $0x32] sm:$0xff]  ;;  %v1597_v54 = vld [vmem:[#allocation2 + $0x3a] sm:$0xff] }
  0xba   : > { %v1618_v29 = vld [vmem:[#allocation2 + $0x13a] sm:$0xff]  ;;  %v1619_v30 = vld [vmem:[#allocation2 + $0x142] sm:$0xff] }
  0xbb   : > { %3481 = vmatprep.subr.msk.bf16.mxu0 %vm4139_vm5, %v4221_v56  ;;  %v4395_v34 = vpack.c.bf16 %v1619_v30, %v1618_v29  ;;  %v522_v37 = vld [vmem:[#allocation2 + $0x68] sm:$0xff]  ;;  %v539_v38 = vld [vmem:[#allocation2 + $0x138] sm:$0xff]  ;;  %v540_v39 = vld [vmem:[#allocation2 + $0x140] sm:$0xff] }
  0xbc   : > { %v406_v57 = vpop.permute.xlu1 %405  ;;  %3292 = vmatpush3.bf16.xpose.msk.msra.mxu1 %vm4139_vm5, %v4214_v51  ;;  %v404_v58 = vpop.permute.xlu0 %403  ;;  %v1384_v59 = vld [vmem:[#allocation2 + $0x79] sm:$0xff]  ;;  %v1385_v60 = vld [vmem:[#allocation2 + $0x81] sm:$0xff]  ;;  %v4405_v47 = vpack.c.bf16 %v540_v39, %v539_v38 }
  0xbd   : > { %492 = vst.msk [vmem:[#allocation2 + $0x99] sm:$0xff] %vm480_vm4, %v406_v57  ;;  %491 = vst.msk [vmem:[#allocation2 + $0x91] sm:$0xff] %vm480_vm4, %v404_v58  ;;  %3295 = vmatprep.subr.msk.bf16.mxu1 %vm4139_vm5, %v4221_v56  ;;  %v4234_v63 = vpack.c.bf16 %v1385_v60, %v1384_v59  ;;  %v1614_v57 = vld [vmem:[#allocation2 + $0x10a] sm:$0xff]  ;;  %v1615_v58 = vld [vmem:[#allocation2 + $0x112] sm:$0xff]  ;;  %v4353_v59 = vpack.c.bf16 %v1597_v54, %v1596_v53 }
  0xbe   : > { %v4355_v60 = vpack.c.bf16 %v1615_v58, %v1614_v57  ;;  %v523_v54 = vld [vmem:[#allocation2 + $0x78] sm:$0xff]  ;;  %v524_v57 = vld [vmem:[#allocation2 + $0x80] sm:$0xff] }
  0xbf   : > { %3484 = vmatpush3.bf16.xpose.msk.msra.mxu0 %vm4139_vm5, %v4234_v63 }
  0xc0   : > { %v442_v0 = vpop.permute.xlu1 %441  ;;  %v440_v1 = vpop.permute.xlu0 %439  ;;  %v1402_v2 = vld [vmem:[#allocation2 + $0x151] sm:$0xff]  ;;  %v1403_v3 = vld [vmem:[#allocation2 + $0x159] sm:$0xff] }
  0xc1   : > { %510 = vst.msk [vmem:[#allocation2 + $0x171] sm:$0xff] %vm480_vm4, %v442_v0  ;;  %509 = vst.msk [vmem:[#allocation2 + $0x169] sm:$0xff] %vm480_vm4, %v440_v1  ;;  %v4241_v4 = vpack.c.bf16 %v1403_v3, %v1402_v2  ;;  %v517_v0 = vld [vmem:[#allocation2 + $0x30] sm:$0xff]  ;;  %v518_v1 = vld [vmem:[#allocation2 + $0x38] sm:$0xff] }
  0xc2   : > { %v535_v2 = vld [vmem:[#allocation2 + $0x108] sm:$0xff]  ;;  %v536_v3 = vld [vmem:[#allocation2 + $0x110] sm:$0xff] }
  0xc3   : > { %3487 = vmatprep.subr.msk.bf16.mxu0 %vm4139_vm5, %v4241_v4  ;;  %v1620_v48 = vld [vmem:[#allocation2 + $0x152] sm:$0xff] }
  0xc4   : > { %v410_v5 = vpop.permute.xlu1 %409  ;;  %3298 = vmatpush3.bf16.xpose.msk.msra.mxu1 %vm4139_vm5, %v4234_v63  ;;  %v408_v6 = vpop.permute.xlu0 %407  ;;  %v1386_v7 = vld [vmem:[#allocation2 + $0x91] sm:$0xff]  ;;  %v1387_v9 = vld [vmem:[#allocation2 + $0x99] sm:$0xff] }
  0xc5   : > { %494 = vst.msk [vmem:[#allocation2 + $0xb1] sm:$0xff] %vm480_vm4, %v410_v5  ;;  %493 = vst.msk [vmem:[#allocation2 + $0xa9] sm:$0xff] %vm480_vm4, %v408_v6  ;;  %3301 = vmatprep.subr.msk.bf16.mxu1 %vm4139_vm5, %v4241_v4  ;;  %v4254_v10 = vpack.c.bf16 %v1387_v9, %v1386_v7  ;;  %v4363_v5 = vpack.c.bf16 %v518_v1, %v517_v0  ;;  %v1598_v6 = vld [vmem:[#allocation2 + $0x4a] sm:$0xff]  ;;  %v1599_v7 = vld [vmem:[#allocation2 + $0x52] sm:$0xff]  ;;  %v4365_v9 = vpack.c.bf16 %v536_v3, %v535_v2 }
  0xc6   : > { %v541_v58 = vld [vmem:[#allocation2 + $0x150] sm:$0xff]  ;;  %v542_v0 = vld [vmem:[#allocation2 + $0x158] sm:$0xff]  ;;  %v4423_v1 = vpack.c.bf16 %v524_v57, %v523_v54 }
  0xc7   : > { %3490 = vmatpush3.bf16.xpose.msk.msra.mxu0 %vm4139_vm5, %v4254_v10  ;;  %v1604_v2 = vld [vmem:[#allocation2 + $0x92] sm:$0xff]  ;;  %v1605_v3 = vld [vmem:[#allocation2 + $0x9a] sm:$0xff]  ;;  %v957_v54 = vld [vmem:[#allocation2 + $0xca] sm:$0xff] }
  0xc8   : > { %v446_v11 = vpop.permute.xlu1 %445  ;;  %v1404_v12 = vld [vmem:[#allocation2 + $0x169] sm:$0xff]  ;;  %v1405_v13 = vld [vmem:[#allocation2 + $0x171] sm:$0xff]  ;;  %v444_v14 = vpop.permute.xlu0 %443 }
  0xc9   : > { %512 = vst.msk [vmem:[#allocation2 + $0x189] sm:$0xff] %vm480_vm4, %v446_v11  ;;  %v4260_v16 = vpack.c.bf16 %v1405_v13, %v1404_v12  ;;  %511 = vst.msk [vmem:[#allocation2 + $0x181] sm:$0xff] %vm480_vm4, %v444_v14  ;;  %v1616_v11 = vld [vmem:[#allocation2 + $0x122] sm:$0xff]  ;;  %v1617_v12 = vld [vmem:[#allocation2 + $0x12a] sm:$0xff]  ;;  %v4373_v13 = vpack.c.bf16 %v1599_v7, %v1598_v6  ;;  %v4425_v6 = vpack.c.bf16 %v542_v0, %v541_v58 }
  0xca   : > { %v4375_v14 = vpack.c.bf16 %v1617_v12, %v1616_v11  ;;  %v1622_v7 = vld [vmem:[#allocation2 + $0x16a] sm:$0xff]  ;;  %v1623_v11 = vld [vmem:[#allocation2 + $0x172] sm:$0xff]  ;;  %v4433_v12 = vpack.c.bf16 %v1605_v3, %v1604_v2  ;;  %v940_v0 = vld [vmem:[#allocation2 + $0x2] sm:$0xff] }
  0xcb   : > { %3493 = vmatprep.subr.msk.bf16.mxu0 %vm4139_vm5, %v4260_v16  ;;  %v941_v2 = vld [vmem:[#allocation2 + $0xa] sm:$0xff] }
  0xcc   : > { %3304 = vmatpush3.bf16.xpose.msk.msra.mxu1 %vm4139_vm5, %v4254_v10  ;;  %v1388_v17 = vld [vmem:[#allocation2 + $0xa9] sm:$0xff]  ;;  %v1389_v18 = vld [vmem:[#allocation2 + $0xb1] sm:$0xff]  ;;  %v3362_v3 = vpack.c.bf16 %v941_v2, %v940_v0 }
  0xcd   : > { %3307 = vmatprep.subr.msk.bf16.mxu1 %vm4139_vm5, %v4260_v16  ;;  %v4272_v19 = vpack.c.bf16 %v1389_v18, %v1388_v17  ;;  %v519_v17 = vld [vmem:[#allocation2 + $0x48] sm:$0xff]  ;;  %v520_v18 = vld [vmem:[#allocation2 + $0x50] sm:$0xff] }
  0xce   : > { %v1606_v29 = vld [vmem:[#allocation2 + $0xaa] sm:$0xff]  ;;  %v1607_v30 = vld [vmem:[#allocation2 + $0xb2] sm:$0xff] }
  0xcf   : > { %3496 = vmatpush3.bf16.xpose.msk.msra.mxu0 %vm4139_vm5, %v4272_v19  ;;  %v4453_v39 = vpack.c.bf16 %v1607_v30, %v1606_v29  ;;  %v2677_v30 = vld [vmem:[%s4878_s2 + $0x28] sm:$0xff] }
  0xd0   : > { %v1406_v21 = vld [vmem:[#allocation2 + $0x181] sm:$0xff]  ;;  %v1407_v22 = vld [vmem:[#allocation2 + $0x189] sm:$0xff] }
  0xd1   : > { %v4277_v23 = vpack.c.bf16 %v1407_v22, %v1406_v21  ;;  %v538_v21 = vld [vmem:[#allocation2 + $0x128] sm:$0xff]  ;;  %v4383_v22 = vpack.c.bf16 %v520_v18, %v519_v17  ;;  %v4435_v17 = vpack.c.bf16 %v1623_v11, %v1622_v7  ;;  %v525_v18 = vld [vmem:[#allocation2 + $0x90] sm:$0xff]  ;;  %v2785_v11 = vld [vmem:[%s4878_s2 + $0x58] sm:$0xff] }
  0xd2   : > { %v4385_v28 = vpack.c.bf16 %v538_v21, %v537_v20  ;;  %v526_v20 = vld [vmem:[#allocation2 + $0x98] sm:$0xff]  ;;  %v543_v21 = vld [vmem:[#allocation2 + $0x168] sm:$0xff] }
  0xd3   : > { %3499 = vmatprep.subr.msk.bf16.mxu0 %vm4139_vm5, %v4277_v23  ;;  %v1625_v38 = vld [vmem:[#allocation2 + $0x18a] sm:$0xff] }
  0xd4   : > { %3310 = vmatpush3.bf16.xpose.msk.msra.mxu1 %vm4139_vm5, %v4272_v19  ;;  %v546_v7 = vld [vmem:[%s4878_s2 + $0x8] sm:$0xff] }
  0xd5   : > { %3313 = vmatprep.subr.msk.bf16.mxu1 %vm4139_vm5, %v4279_v25 }
  0xd7   : > { %3502 = vmatpush3.bf16.xpose.msk.msra.mxu0 %vm4139_vm5, %v4145_v15  ;;  %v1613_v15 = vld [vmem:[#allocation2 + $0xfa] sm:$0xff] }
  0xd8   : > { %3505 = vmatprep.subr.msk.bf16.mxu0 %vm4139_vm5, %v4290_v32 }
  0xdb   : > { %2972 = vmatmul.mubr.msk.f32.vlgmr.msra.gmra.mrb[0].mxu1 %vm217_vm1, %v4120_v61  ;;  %v4318_v61 = vpack.c.bf16 %v1613_v15, %v1612_v42  ;;  %v1602_v15 = vld [vmem:[#allocation2 + $0x7a] sm:$0xff] }
  0xdc   : > { %3316 = vmatpush3.bf16.xpose.msk.msra.mxu1 %vm4139_vm5, %v3314_v33  ;;  %2973 = vmatprep.mubr.msk.f32.mxu1 %vm217_vm1, %v2607_v35  ;;  %v4393_v33 = vpack.c.bf16 %v1601_v27, %v1600_v24  ;;  %v544_v24 = vld [vmem:[#allocation2 + $0x170] sm:$0xff]  ;;  %v4443_v27 = vpack.c.bf16 %v526_v20, %v525_v18  ;;  %v1841_v18 = vld [vmem:[#allocation2 + $0x188] sm:$0xff] }
  0xdd   : > { %3319 = vmatprep.subr.msk.bf16.mxu1 %vm4139_vm5, %v4303_v40 }
  0xde   : > { %3116 = vmatmul.mubr.msk.f32.vlgmr.msra.gmra.mrb[0].mxu0 %vm217_vm1, %v4127_v62  ;;  %v533_v62 = vld [vmem:[#allocation2 + $0xf0] sm:$0xff] }
  0xdf   : > { %3508 = vmatpush3.bf16.xpose.msk.msra.mxu0 %vm4139_vm5, %v4311_v43  ;;  %2974 = vmatmul.mubr.msk.f32.gmra.mrb[2].mxu1 %vm217_vm1, %v2607_v35  ;;  %v4343_v55 = vpack.c.bf16 %v534_v49, %v533_v62  ;;  %v521_v35 = vld [vmem:[#allocation2 + $0x60] sm:$0xff] }
  0xe0   : > { %3511 = vmatprep.subr.msk.bf16.mxu0 %vm4139_vm5, %v4318_v61  ;;  %3117 = vmatprep.mubr.msk.f32.mxu0 %vm217_vm1, %v2749_v44  ;;  %v4403_v42 = vpack.c.bf16 %v522_v37, %v521_v35  ;;  %v1621_v62 = vld [vmem:[#allocation2 + $0x15a] sm:$0xff]  ;;  %v4445_v35 = vpack.c.bf16 %v544_v24, %v543_v21  ;;  %v1624_v37 = vld [vmem:[#allocation2 + $0x182] sm:$0xff] }
  0xe1   : > { %3007 = vmatprep.mubr.msk.f32.mxu1 %vm217_vm1, %v4323_v45  ;;  %v4415_v53 = vpack.c.bf16 %v1621_v62, %v1620_v48  ;;  %v528_v48 = vld [vmem:[#allocation2 + $0xb0] sm:$0xff]  ;;  %v956_v62 = vld [vmem:[#allocation2 + $0xc2] sm:$0xff]  ;;  %v1842_v21 = vld [vmem:[#allocation2 + $0x198] sm:$0xff] }
  0xe2   : > { %3118 = vmatmul.mubr.msk.f32.gmra.mrb[2].mxu0 %vm217_vm1, %v2749_v44  ;;  %v1603_v44 = vld [vmem:[#allocation2 + $0x82] sm:$0xff]  ;;  %v4465_v58 = vpack.c.bf16 %v957_v54, %v956_v62 }
  0xe3   : > { %3151 = vmatprep.mubr.msk.f32.mxu0 %vm217_vm1, %v4336_v50  ;;  %v4413_v49 = vpack.c.bf16 %v1603_v44, %v1602_v15  ;;  %v4455_v15 = vpack.c.bf16 %v1625_v38, %v1624_v37  ;;  %v527_v44 = vld [vmem:[#allocation2 + $0xa8] sm:$0xff]  ;;  %v1843_v24 = vld [vmem:[#allocation2 + $0x1a0] sm:$0xff]  ;;  %v3865_v37 = vmov 0  }
  0xe4   : > { %3322 = vmatpush3.bf16.xpose.msk.msra.mxu1 %vm4139_vm5, %v4340_v52  ;;  %v4463_v57 = vpack.c.bf16 %v528_v48, %v527_v44  ;;  %v3593_v29 = vpack.c.bf16 %v1843_v24, %v1842_v21  ;;  %3790 = vset.pattern.permute.xlu1 %v3865_v37 }
  0xe5   : > { %3325 = vmatprep.subr.msk.bf16.mxu1 %vm4139_vm5, %v4343_v55  ;;  %3789 = vset.pattern.permute.xlu0 %v3865_v37 }
  0xe7   : > { %3514 = vmatpush3.bf16.xpose.msk.msra.mxu0 %vm4139_vm5, %v4353_v59 }
  0xe8   : > { %3517 = vmatprep.subr.msk.bf16.mxu0 %vm4139_vm5, %v4355_v60 }
  0xec   : > { %3328 = vmatpush3.bf16.xpose.msk.msra.mxu1 %vm4139_vm5, %v4363_v5 }
  0xed   : > { %3331 = vmatprep.subr.msk.bf16.mxu1 %vm4139_vm5, %v4365_v9 }
  0xef   : > { %3520 = vmatpush3.bf16.xpose.msk.msra.mxu0 %vm4139_vm5, %v4373_v13 }
  0xf0   : > { %3523 = vmatprep.subr.msk.bf16.mxu0 %vm4139_vm5, %v4375_v14 }
  0xf4   : > { %3334 = vmatpush3.bf16.xpose.msk.msra.mxu1 %vm4139_vm5, %v4383_v22 }
  0xf5   : > { %3337 = vmatprep.subr.msk.bf16.mxu1 %vm4139_vm5, %v4385_v28 }
  0xf7   : > { %3526 = vmatpush3.bf16.xpose.msk.msra.mxu0 %vm4139_vm5, %v4393_v33 }
  0xf8   : > { %3529 = vmatprep.subr.msk.bf16.mxu0 %vm4139_vm5, %v4395_v34 }
  0xfc   : > { %3340 = vmatpush3.bf16.xpose.msk.msra.mxu1 %vm4139_vm5, %v4403_v42 }
  0xfd   : > { %3343 = vmatprep.subr.msk.bf16.mxu1 %vm4139_vm5, %v4405_v47 }
  0xff   : > { %3532 = vmatpush3.bf16.xpose.msk.msra.mxu0 %vm4139_vm5, %v4413_v49 }
 0x100   : > { %3535 = vmatprep.subr.msk.bf16.mxu0 %vm4139_vm5, %v4415_v53 }
 0x104   : > { %3346 = vmatpush3.bf16.xpose.msk.msra.mxu1 %vm4139_vm5, %v4423_v1 }
 0x105   : > { %3349 = vmatprep.subr.msk.bf16.mxu1 %vm4139_vm5, %v4425_v6 }
 0x107   : > { %3538 = vmatpush3.bf16.xpose.msk.msra.mxu0 %vm4139_vm5, %v4433_v12 }
 0x108   : > { %3541 = vmatprep.subr.msk.bf16.mxu0 %vm4139_vm5, %v4435_v17 }
 0x10c   : > { %3352 = vmatpush3.bf16.xpose.msk.msra.mxu1 %vm4139_vm5, %v4443_v27 }
 0x10d   : > { %3355 = vmatprep.subr.msk.bf16.mxu1 %vm4139_vm5, %v4445_v35 }
 0x10f   : > { %3544 = vmatpush3.bf16.xpose.msk.msra.mxu0 %vm4139_vm5, %v4453_v39 }
 0x110   : > { %3547 = vmatprep.subr.msk.bf16.mxu0 %vm4139_vm5, %v4455_v15 }
 0x114   : > { %3358 = vmatpush3.bf16.xpose.msk.msra.mxu1 %vm4139_vm5, %v4463_v57 }
 0x115   : > { %3361 = vmatprep.subr.msk.bf16.mxu1 %vm4139_vm5, %v4465_v58 }
 0x117   : > { %3550 = vmatpush3.bf16.xpose.msk.msra.mxu0 %vm4139_vm5, %v4465_v58 }
 0x118   : > { %3553 = vmatprep.subr.msk.bf16.mxu0 %vm4139_vm5, %v4343_v55 }
 0x11b   : > { %3008 = vmatmul.mubr.msk.f32.vlgmr.msra.gmra.mrb[0].mxu1 %vm217_vm1, %v4323_v45  ;;  %v2676_v45 = vld [vmem:[%s4878_s2 + $0x20] sm:$0xff] }
 0x11c   : > { %3364 = vmatpush3.bf16.xpose.msk.msra.mxu1 %vm4139_vm5, %v3362_v3  ;;  %3009 = vmatprep.mubr.msk.f32.mxu1 %vm217_vm1, %v546_v7 }
 0x11d   : > { %3367 = vmatprep.subr.msk.bf16.mxu1 %vm4139_vm5, %v4290_v32 }
 0x11e   : > { %3152 = vmatmul.mubr.msk.f32.vlgmr.msra.gmra.mrb[0].mxu0 %vm217_vm1, %v4336_v50  ;;  %v2820_v50 = vld [vmem:[%s4878_s2 + $0x60] sm:$0xff] }
 0x11f   : > { %3556 = vmatpush3.bf16.xpose.msk.msra.mxu0 %vm4139_vm5, %v4363_v5  ;;  %3010 = vmatmul.mubr.msk.f32.gmra.mrb[2].mxu1 %vm217_vm1, %v546_v7 }
 0x120   : > { %3559 = vmatprep.subr.msk.bf16.mxu0 %vm4139_vm5, %v4365_v9  ;;  %3153 = vmatprep.mubr.msk.f32.mxu0 %vm217_vm1, %v2785_v11 }
 0x121   : > { %3043 = vmatprep.mubr.msk.f32.mxu1 %vm217_vm1, %v2676_v45 }
 0x122   : > { %3154 = vmatmul.mubr.msk.f32.gmra.mrb[2].mxu0 %vm217_vm1, %v2785_v11 }
 0x123   : > { %3187 = vmatprep.mubr.msk.f32.mxu0 %vm217_vm1, %v2820_v50 }
 0x124   : > { %3370 = vmatpush3.bf16.xpose.msk.msra.mxu1 %vm4139_vm5, %v4311_v43  ;;  %v1840_v43 = vld [vmem:[#allocation2 + $0x180] sm:$0xff] }
 0x125   : > { %3373 = vmatprep.subr.msk.bf16.mxu1 %vm4139_vm5, %v4318_v61  ;;  %v4566_v20 = vpack.c.bf16 %v1841_v18, %v1840_v43 }
 0x127   : > { %3562 = vmatpush3.bf16.xpose.msk.msra.mxu0 %vm4139_vm5, %v4383_v22 }
 0x128   : > { %3565 = vmatprep.subr.msk.bf16.mxu0 %vm4139_vm5, %v4385_v28 }
 0x12c   : > { %3376 = vmatpush3.bf16.xpose.msk.msra.mxu1 %vm4139_vm5, %v4353_v59 }
 0x12d   : > { %3379 = vmatprep.subr.msk.bf16.mxu1 %vm4139_vm5, %v4355_v60 }
 0x12f   : > { %3568 = vmatpush3.bf16.xpose.msk.msra.mxu0 %vm4139_vm5, %v4403_v42 }
 0x130   : > { %3571 = vmatprep.subr.msk.bf16.mxu0 %vm4139_vm5, %v4405_v47 }
 0x134   : > { %3382 = vmatpush3.bf16.xpose.msk.msra.mxu1 %vm4139_vm5, %v4373_v13 }
 0x135   : > { %3385 = vmatprep.subr.msk.bf16.mxu1 %vm4139_vm5, %v4375_v14 }
 0x137   : > { %3574 = vmatpush3.bf16.xpose.msk.msra.mxu0 %vm4139_vm5, %v4423_v1 }
 0x138   : > { %3577 = vmatprep.subr.msk.bf16.mxu0 %vm4139_vm5, %v4425_v6 }
 0x13c   : > { %3388 = vmatpush3.bf16.xpose.msk.msra.mxu1 %vm4139_vm5, %v4393_v33 }
 0x13d   : > { %3391 = vmatprep.subr.msk.bf16.mxu1 %vm4139_vm5, %v4395_v34 }
 0x13f   : > { %3580 = vmatpush3.bf16.xpose.msk.msra.mxu0 %vm4139_vm5, %v4443_v27 }
 0x140   : > { %3583 = vmatprep.subr.msk.bf16.mxu0 %vm4139_vm5, %v4445_v35 }
 0x144   : > { %3394 = vmatpush3.bf16.xpose.msk.msra.mxu1 %vm4139_vm5, %v4413_v49 }
 0x145   : > { %3397 = vmatprep.subr.msk.bf16.mxu1 %vm4139_vm5, %v4415_v53 }
 0x147   : > { %3586 = vmatpush3.bf16.xpose.msk.msra.mxu0 %vm4139_vm5, %v4463_v57 }
 0x148   : > { %3589 = vmatprep.subr.msk.bf16.mxu0 %vm4139_vm5, %v4566_v20 }
 0x14c   : > { %3400 = vmatpush3.bf16.xpose.msk.msra.mxu1 %vm4139_vm5, %v4433_v12 }
 0x14d   : > { %3403 = vmatprep.subr.msk.bf16.mxu1 %vm4139_vm5, %v4435_v17 }
 0x14f   : > { %3592 = vmatpush3.bf16.xpose.msk.msra.mxu0 %vm4139_vm5, %v4279_v25 }
 0x150   : > { %3595 = vmatprep.subr.msk.bf16.mxu0 %vm4139_vm5, %v3593_v29 }
 0x154   : > { %3406 = vmatpush3.bf16.xpose.msk.msra.mxu1 %vm4139_vm5, %v4453_v39 }
 0x155   : > { %3409 = vmatprep.subr.msk.bf16.mxu1 %vm4139_vm5, %v4303_v40 }
 0x157   : > { %3598 = vmatpush3.bf16.xpose.msk.msra.mxu0 %vm4139_vm5, %v4303_v40  ;;  %v2712_v40 = vld [vmem:[%s4878_s2 + $0x30] sm:$0xff] }
 0x158   : > { %3601 = vmatprep.subr.msk.bf16.mxu0 %vm4139_vm5, %v4162_v26  ;;  %v2821_v26 = vld [vmem:[%s4878_s2 + $0x68] sm:$0xff] }
 0x15b   : > { %3044 = vmatmul.mubr.msk.f32.vlgmr.msra.gmra.mrb[0].mxu1 %vm217_vm1, %v2676_v45 }
 0x15c   : > { %3412 = vmatpush3.bf16.xpose.msk.msra.mxu1 %vm4139_vm5, %v4340_v52  ;;  %3045 = vmatprep.mubr.msk.f32.mxu1 %vm217_vm1, %v2677_v30  ;;  %v2467_v52 = vld [vmem:[%s4879_s3 + $0x8] sm:$0xff] }
 0x15d   : > { %3415 = vmatprep.subr.msk.bf16.mxu1 %vm4139_vm5, %v4343_v55  ;;  %v2856_v55 = vld [vmem:[%s4878_s2 + $0x70] sm:$0xff]  ;;  %2475 = vperm.xlu1 %3790, %v2467_v52  }
 0x15e   : > { %3188 = vmatmul.mubr.msk.f32.vlgmr.msra.gmra.mrb[0].mxu0 %vm217_vm1, %v2820_v50 }
 0x15f   : > { %3604 = vmatpush3.bf16.xpose.msk.msra.mxu0 %vm4139_vm5, %v4174_v31  ;;  %3046 = vmatmul.mubr.msk.f32.gmra.mrb[2].mxu1 %vm217_vm1, %v2677_v30  ;;  %v2466_v31 = vld [vmem:[%s4879_s3] sm:$0xff] }
 0x160   : > { %3607 = vmatprep.subr.msk.bf16.mxu0 %vm4139_vm5, %v4181_v36  ;;  %3189 = vmatprep.mubr.msk.f32.mxu0 %vm217_vm1, %v2821_v26  ;;  %v2060_v36 = vld [vmem:[#allocation2 + $0x199] sm:$0xff] }
 0x161   : > { %3079 = vmatprep.mubr.msk.f32.mxu1 %vm217_vm1, %v2712_v40  ;;  %2470 = vperm.xlu0 %3789, %v2466_v31  }
 0x162   : > { %3190 = vmatmul.mubr.msk.f32.gmra.mrb[2].mxu0 %vm217_vm1, %v2821_v26 }
 0x163   : > { %3223 = vmatprep.mubr.msk.f32.mxu0 %vm217_vm1, %v2856_v55 }
 0x164   : > { %3418 = vmatpush3.bf16.xpose.msk.msra.mxu1 %vm4139_vm5, %v4363_v5 }
 0x165   : > { %3421 = vmatprep.subr.msk.bf16.mxu1 %vm4139_vm5, %v4365_v9 }
 0x167   : > { %3610 = vmatpush3.bf16.xpose.msk.msra.mxu0 %vm4139_vm5, %v4194_v41  ;;  %v2061_v41 = vld [vmem:[#allocation2 + $0x1a1] sm:$0xff] }
 0x168   : > { %3613 = vmatprep.subr.msk.bf16.mxu0 %vm4139_vm5, %v4201_v46  ;;  %v2043_v46 = vld [vmem:[#allocation2 + $0xc9] sm:$0xff] }
 0x16c   : > { %3424 = vmatpush3.bf16.xpose.msk.msra.mxu1 %vm4139_vm5, %v4383_v22 }
 0x16d   : > { %3427 = vmatprep.subr.msk.bf16.mxu1 %vm4139_vm5, %v4385_v28 }
 0x16f   : > { %3616 = vmatpush3.bf16.xpose.msk.msra.mxu0 %vm4139_vm5, %v4214_v51  ;;  %v2042_v51 = vld [vmem:[#allocation2 + $0xc1] sm:$0xff] }
 0x170   : > { %3619 = vmatprep.subr.msk.bf16.mxu0 %vm4139_vm5, %v4221_v56  ;;  %v3641_v56 = vpack.c.bf16 %v2061_v41, %v2060_v36 }
 0x174   : > { %3430 = vmatpush3.bf16.xpose.msk.msra.mxu1 %vm4139_vm5, %v4403_v42 }
 0x175   : > { %3433 = vmatprep.subr.msk.bf16.mxu1 %vm4139_vm5, %v4405_v47 }
 0x177   : > { %3622 = vmatpush3.bf16.xpose.msk.msra.mxu0 %vm4139_vm5, %v4234_v63  ;;  %v3638_v63 = vpack.c.bf16 %v2043_v46, %v2042_v51 }
 0x178   : > { %3625 = vmatprep.subr.msk.bf16.mxu0 %vm4139_vm5, %v4241_v4  ;;  %v2045_v4 = vld [vmem:[#allocation2 + $0xe1] sm:$0xff] }
 0x17c   : > { %3436 = vmatpush3.bf16.xpose.msk.msra.mxu1 %vm4139_vm5, %v4423_v1 }
 0x17d   : > { %3439 = vmatprep.subr.msk.bf16.mxu1 %vm4139_vm5, %v4425_v6 }
 0x17f   : > { %3628 = vmatpush3.bf16.xpose.msk.msra.mxu0 %vm4139_vm5, %v4254_v10  ;;  %v2044_v10 = vld [vmem:[#allocation2 + $0xd9] sm:$0xff] }
 0x180   : > { %3631 = vmatprep.subr.msk.bf16.mxu0 %vm4139_vm5, %v4260_v16  ;;  %v3644_v16 = vpack.c.bf16 %v2045_v4, %v2044_v10 }
 0x184   : > { %3442 = vmatpush3.bf16.xpose.msk.msra.mxu1 %vm4139_vm5, %v4443_v27 }
 0x185   : > { %3445 = vmatprep.subr.msk.bf16.mxu1 %vm4139_vm5, %v4445_v35 }
 0x187   : > { %3634 = vmatpush3.bf16.xpose.msk.msra.mxu0 %vm4139_vm5, %v4272_v19  ;;  %v2713_v19 = vld [vmem:[%s4878_s2 + $0x38] sm:$0xff] }
 0x188   : > { %3637 = vmatprep.subr.msk.bf16.mxu0 %vm4139_vm5, %v4277_v23  ;;  %v2857_v23 = vld [vmem:[%s4878_s2 + $0x78] sm:$0xff] }
 0x18c   : > { %3448 = vmatpush3.bf16.xpose.msk.msra.mxu1 %vm4139_vm5, %v4463_v57 }
 0x18d   : > { %3451 = vmatprep.subr.msk.bf16.mxu1 %vm4139_vm5, %v4566_v20 }
 0x18f   : > { %3640 = vmatpush3.bf16.xpose.msk.msra.mxu0 %vm4139_vm5, %v3638_v63 }
 0x190   : > { %3643 = vmatprep.subr.msk.bf16.mxu0 %vm4139_vm5, %v3641_v56 }
 0x194   : > { %3454 = vmatpush3.bf16.xpose.msk.msra.mxu1 %vm4139_vm5, %v4279_v25  ;;  %v2893_v25 = vld [vmem:[%s4878_s2 + $0x88] sm:$0xff] }
 0x195   : > { %3695 = vmatprep.subr.msk.bf16.mxu1 %vm4139_vm5, %v4318_v61 }
 0x197   : > { %3646 = vmatpush3.bf16.xpose.msk.msra.mxu0 %vm4139_vm5, %v3644_v16 }
 0x198   : > { %3649 = vmatprep.subr.msk.bf16.mxu0 %vm4139_vm5, %v4318_v61  ;;  %v2892_v61 = vld [vmem:[%s4878_s2 + $0x80] sm:$0xff] }
 0x19b   : > { %3080 = vmatmul.mubr.msk.f32.vlgmr.msra.gmra.mrb[0].mxu1 %vm217_vm1, %v2712_v40 }
 0x19c   : > { %3703 = vmatpush3.bf16.xpose.msk.msra.mxu1 %vm4139_vm5, %v4353_v59  ;;  %3081 = vmatprep.mubr.msk.f32.mxu1 %vm217_vm1, %v2713_v19 }
 0x19d   : > { %3696 = vmatprep.subr.msk.bf16.mxu1 %vm4139_vm5, %v4355_v60 }
 0x19e   : > { %3224 = vmatmul.mubr.msk.f32.vlgmr.msra.gmra.mrb[0].mxu0 %vm217_vm1, %v2856_v55 }
 0x19f   : > { %3082 = vmatmul.mubr.msk.f32.gmra.mrb[2].mxu1 %vm217_vm1, %v2713_v19  ;;  %3652 = vmatpush3.bf16.xpose.msk.msra.mxu0 %vm4139_vm5, %v4353_v59  ;;  %v2278_v59 = vld [vmem:[#allocation2 + $0x19a] sm:$0xff] }
 0x1a0   : > { %3655 = vmatprep.subr.msk.bf16.mxu0 %vm4139_vm5, %v4355_v60  ;;  %3225 = vmatprep.mubr.msk.f32.mxu0 %vm217_vm1, %v2857_v23  ;;  %v2279_v60 = vld [vmem:[#allocation2 + $0x1a2] sm:$0xff] }
 0x1a1   : > { %3261 = vmatprep.mubr.msk.f32.mxu1 %vm217_vm1, %v2893_v25  ;;  %v3689_v5 = vpack.c.bf16 %v2279_v60, %v2278_v59 }
 0x1a2   : > { %3226 = vmatmul.mubr.msk.f32.gmra.mrb[2].mxu0 %vm217_vm1, %v2857_v23 }
 0x1a3   : > { %3259 = vmatprep.mubr.msk.f32.mxu0 %vm217_vm1, %v2892_v61 }
 0x1a4   : > { %3704 = vmatpush3.bf16.xpose.msk.msra.mxu1 %vm4139_vm5, %v4373_v13 }
 0x1a5   : > { %3697 = vmatprep.subr.msk.bf16.mxu1 %vm4139_vm5, %v4375_v14 }
 0x1a7   : > { %3658 = vmatpush3.bf16.xpose.msk.msra.mxu0 %vm4139_vm5, %v4373_v13 }
 0x1a8   : > { %3661 = vmatprep.subr.msk.bf16.mxu0 %vm4139_vm5, %v4375_v14 }
 0x1ac   : > { %3705 = vmatpush3.bf16.xpose.msk.msra.mxu1 %vm4139_vm5, %v4393_v33 }
 0x1ad   : > { %3698 = vmatprep.subr.msk.bf16.mxu1 %vm4139_vm5, %v4395_v34 }
 0x1af   : > { %3664 = vmatpush3.bf16.xpose.msk.msra.mxu0 %vm4139_vm5, %v4393_v33 }
 0x1b0   : > { %3667 = vmatprep.subr.msk.bf16.mxu0 %vm4139_vm5, %v4395_v34 }
 0x1b4   : > { %3706 = vmatpush3.bf16.xpose.msk.msra.mxu1 %vm4139_vm5, %v4413_v49 }
 0x1b5   : > { %3699 = vmatprep.subr.msk.bf16.mxu1 %vm4139_vm5, %v4415_v53 }
 0x1b7   : > { %3670 = vmatpush3.bf16.xpose.msk.msra.mxu0 %vm4139_vm5, %v4413_v49 }
 0x1b8   : > { %3673 = vmatprep.subr.msk.bf16.mxu0 %vm4139_vm5, %v4415_v53 }
 0x1bc   : > { %3707 = vmatpush3.bf16.xpose.msk.msra.mxu1 %vm4139_vm5, %v4433_v12 }
 0x1bd   : > { %3700 = vmatprep.subr.msk.bf16.mxu1 %vm4139_vm5, %v4435_v17 }
 0x1bf   : > { %3676 = vmatpush3.bf16.xpose.msk.msra.mxu0 %vm4139_vm5, %v4433_v12 }
 0x1c0   : > { %3679 = vmatprep.subr.msk.bf16.mxu0 %vm4139_vm5, %v4435_v17 }
 0x1c4   : > { %3708 = vmatpush3.bf16.xpose.msk.msra.mxu1 %vm4139_vm5, %v4453_v39 }
 0x1c5   : > { %3701 = vmatprep.subr.msk.bf16.mxu1 %vm4139_vm5, %v4455_v15 }
 0x1c7   : > { %3682 = vmatpush3.bf16.xpose.msk.msra.mxu0 %vm4139_vm5, %v4453_v39 }
 0x1c8   : > { %3685 = vmatprep.subr.msk.bf16.mxu0 %vm4139_vm5, %v4455_v15 }
 0x1cc   : > { %3709 = vmatpush3.bf16.xpose.msk.msra.mxu1 %vm4139_vm5, %v4465_v58 }
 0x1cd   : > { %3702 = vmatprep.subr.msk.bf16.mxu1 %vm4139_vm5, %v3689_v5 }
 0x1cf   : > { %3688 = vmatpush3.bf16.xpose.msk.msra.mxu0 %vm4139_vm5, %v4465_v58 }
 0x1d0   : > { %3691 = vmatprep.subr.msk.bf16.mxu0 %vm4139_vm5, %v3689_v5 }
 0x1d4   : > { %3710 = vmatpush3.bf16.xpose.msk.msra.mxu1 %vm4139_vm5, %v4290_v32 }
 0x1d7   : > { %3694 = vmatpush3.bf16.xpose.msk.msra.mxu0 %vm4139_vm5, %v4290_v32 }
 0x1db   : > { %3262 = vmatmul.mubr.msk.f32.vlgmr.msra.gmra.mrb[4].mxu1 %vm217_vm1, %v2893_v25 }
 0x1dc   : > { %v2476_v49 = vpop.permute.xlu1 %2475 }
 0x1de   : > { %3260 = vmatmul.mubr.msk.f32.vlgmr.msra.gmra.mrb[0].mxu0 %vm217_vm1, %v2892_v61 }
 0x1e0   : > { %v2471_v32 = vpop.permute.xlu0 %2470 }
 0x26e   : > { %v1361_v9 = vpop.f32.mrb[0].mxu1 }
 0x26f   : > { %v1363_v13 = vpop.f32.mrb[1].mxu1 }
 0x272   : > { %v1367_v14 = vpop.f32.mrb[2].mxu1 }
 0x273   : > { %v1369_v22 = vpop.f32.mrb[3].mxu1 }
 0x275   : > { %v2239_v28 = vpop.f32.mrb[2].mxu0 }
 0x276   : > { %v3713_v33 = vadd.f32 %v2239_v28, %v1367_v14  ;;  %v2241_v34 = vpop.f32.mrb[3].mxu0 }
 0x277   : > { %v3715_v42 = vadd.f32 %v2241_v34, %v1369_v22 }
 0x2ae   : > { %v2457_v47 = vpop.f32.mrb[4].mxu1 }
 0x2af   : > { %v3714_v53 = vadd.f32 %v3713_v33, %v2457_v47  ;;  %v2459_v1 = vpop.f32.mrb[5].mxu1 }
 0x2b0   : > { %v3716_v6 = vadd.f32 %v3715_v42, %v2459_v1 }
 0x2b1   : > { %v2480_v12 = vadd.f32 %v3714_v53, %v2476_v49  ;;  %v2451_v8 = vpop.f32.mrb[0].mxu0 }
 0x2b2   : > { %v2481_v17 = vadd.f32 %v3716_v6, %v2476_v49  ;;  %v3711_v27 = vadd.f32 %v2451_v8, %v1361_v9  ;;  %v2453_v35 = vpop.f32.mrb[1].mxu0 }
 0x2b3   : > { %v2484_v38 = vmin.f32 %v2480_v12, 0.0  ;;  %v3712_v39 = vadd.f32 %v2453_v35, %v1363_v13  ;;  %vm2488_vm6 = vcmp.gt.f32.partialorder %v2480_v12, 0.0 }
 0x2b4   : > { %v2485_v15 = vmin.f32 %v2481_v17, 0.0  ;;  %v2478_v44 = vadd.f32 %v3711_v27, %v2471_v32  ;;  %vm2489_vm7 = vcmp.gt.f32.partialorder %v2481_v17, 0.0 }
 0x2b5   : > { %v2494_v48 = vmul.f32 1.442695, %v2484_v38  ;;  %v2479_v62 = vadd.f32 %v3712_v39, %v2471_v32 }
 0x2b6   : > { %v2496_v54 = vmul.f32 1.442695, %v2485_v15  ;;  %v2482_v57 = vmin.f32 %v2478_v44, 0.0  ;;  %vm2486_vm8 = vcmp.gt.f32.partialorder %v2478_v44, 0.0 }
 0x2b7   : > { %3791 = vpow2.f32 %v2494_v48  ;;  %v2483_v58 = vmin.f32 %v2479_v62, 0.0  ;;  %vm2487_vm9 = vcmp.gt.f32.partialorder %v2479_v62, 0.0 }
 0x2b8   : > { %3793 = vpow2.f32 %v2496_v54  ;;  %v2490_v0 = vmul.f32 1.442695, %v2482_v57 }
 0x2b9   : > { %v2492_v2 = vmul.f32 1.442695, %v2483_v58 }
 0x2ba   : > { %3795 = vpow2.f32 %v2490_v0 }
 0x2bb   : > { %3797 = vpow2.f32 %v2492_v2 }
 0x2c1   : > { %v3792_v3 = vpop.eup %3791 }
 0x2c2   : > { %v3794_v7 = vpop.eup %3793  ;;  %v2930_v11 = vadd.f32 -1.0, %v3792_v3 }
 0x2c3   : > { %v2931_v45 = vadd.f32 -1.0, %v3794_v7 }
 0x2c4   : > { %v3796_v50 = vpop.eup %3795  ;;  %v2504_v43 = vsel %vm2488_vm6, %v2480_v12, %v2930_v11 }
 0x2c5   : > { %v3798_v18 = vpop.eup %3797  ;;  %v2505_v20 = vsel %vm2489_vm7, %v2481_v17, %v2931_v45  ;;  %2508 = vst [vmem:[%s205_s28 + $0x10] sm:$0xff] %v2504_v43  ;;  %v2928_v21 = vadd.f32 -1.0, %v3796_v50 }
 0x2c6   : > { %2509 = vst [vmem:[%s205_s28 + $0x18] sm:$0xff] %v2505_v20  ;;  %v2929_v24 = vadd.f32 -1.0, %v3798_v18 }
 0x2c7   : > { %v2502_v29 = vsel %vm2486_vm8, %v2478_v44, %v2928_v21 }
 0x2c8   : > { %v2503_v30 = vsel %vm2487_vm9, %v2479_v62, %v2929_v24  ;;  %2506 = vst [vmem:[%s205_s28] sm:$0xff] %v2502_v29 }
 0x2c9   : > { %2507 = vst [vmem:[%s205_s28 + $0x8] sm:$0xff] %v2503_v30 }
 0x2ca   : > { %3812 = shalt.err (!%p3809_p3)
}
 0x2cb   : > { %s3813_s12 = scalar_lea.hbm %s4833_s19, 512  ;;  %s3817_s20 = scalar_lea.hbm %s4880_s4, 1024 }
 0x2cc   : > { %p3814_p4 = scmp.ne.s32.totalorder %s4833_s19, %s3813_s12  ;;  %p3818_p9 = scmp.lt.u32.totalorder %s4833_s19, %s4880_s4 }
 0x2cd   : > { %p3819_p10 = scmp.lt.u32.totalorder %s3817_s20, %s3813_s12  ;;  %p3821_p12 = scmp.lt.u32.totalorder %s3813_s12, %s4833_s19 }
 0x2ce   : > { %p3815_p7 = pnand %p3814_p4, %p3933_p5 }
 0x2cf   : > { %p3820_p11 = por %p3819_p10, %p3818_p9 }
 0x2d0   : > { %p3816_p8 = pneg %p3815_p7 }
 0x2d1   : > { %p3822_p13 = por %p3821_p12, %p3820_p11 }
 0x2d3   : > { %p3823_p0 = pnand %p3822_p13, %p3816_p8 }
 0x2d5   : > { %3826 = shalt.err (!%p3823_p0)
}
 0x2d6   : > { %s3867_s27 = smov 256   ;;  %s3868_s28 = smov 512  }
 0x2d7   : > { %s3869_s30 = smov 16  }
 0x2d8   : > { %3744 = dma.vmem_to_hbm [thread:$0]  (%p3933_p5), %s4828_s29, 512, %s4833_s19, %s4835_s7, %s3867_s27, %s3868_s28, %s3869_s30  }
 0x2d9 PF: > { %p3750_p1 = scmp.ge.s32.totalorder %s3861_s18, 2  ;;  %s2539_s5 = sand.u32 1, %s3849_s15  }
 0x2da   : > { %s2540_s6 = scalar_lea.sflag [#allocation4], %s2539_s5 }
 0x2db   : > { %p3747_p2 = pnand %p3750_p1, %p3937_p6 }
 0x2dd   : > { %3844 = dma.done.wait (!%p3747_p2), %s2540_s6, 512  }
 0x2de   : > { %3846 = vsyncadd (!%p3747_p2), %s2540_s6, 4294966784  ;;  %p14_p3 = scmp.ge.s32.totalorder %s3920_s21, 4   ;;  %s4885_s15 = smov %s3853_s16 }
 0x2df   : > { %s4886_s16 = smov %s3857_s17  ;;  %s4887_s17 = smov %s3931_s24 }
 0x2e0   : > { %s4888_s18 = smov %s3920_s21  ;;  %16 = sbr.rel (!%p14_p3) target bundleno = 3 (0x3), region = 85 }
 0x2e7   :  { %2545 = vsyncpa [#allocation4], 1 }
 0x2e8   :  { %2547 = vsyncpa [#allocation4 + $0x1], 1 }

</bundles_post_ra>
